<compile_context>
chip_gen: v7x
topology: tpu7x:2x2x1
jax: 0.10.0
libtpu: 0.0.40
codegen_flags: <defaults>
</compile_context>

<pallas_src>
import jax
import jax.numpy as jnp
from jax import lax
from jax.experimental import pallas as pl
from jax.experimental.pallas import tpu as pltpu

NUM_OF_QUESTIONS = 16  # C.NUM_OF_QUESTIONS (synthetic)
PACK = 128             # lane-dense packed output width (logits | hidden | zeros)


# ----------------------------- fused forward kernel --------------------------
def build_kernel(B, T, N, E, H, Q, L):
    """Fused forward kernel for fixed (static) shapes. Rows are time-major (t*B + b)."""
    E2 = E // 2
    H3 = 3 * H
    f32, bf16 = jnp.float32, jnp.bfloat16

    def kernel(*refs):
        (ques_ref, adj_in_ref, adj_out_ref,
         w1c_ref, b1i_ref, b1o_ref,
         w2i_ref, b2i_ref, w2o_ref, b2o_ref,
         x_ref) = refs[:11]
        p = 11
        gru_refs = []
        for l in range(L):
            n = 5 if l == 0 else 4
            gru_refs.append(refs[p:p + n])
            p += n
        fcw_ref, fcb_ref = refs[p], refs[p + 1]
        p += 2
        out_ref = refs[p]
        p += 1
        gi_scr, hseq_scr = refs[p], refs[p + 1]        # [T, B, 3H], [T, B, H]

        # ---------------- two 2-layer GCNs (gc1 -> relu -> gc2) ----------------
        # First-layer feature matmul fused across the in/out branches.
        ques_b = ques_ref[...]                                         # [N, E] bf16
        h1 = jnp.dot(ques_b, w1c_ref[...], preferred_element_type=f32)  # [N, 2E]
        adj_i = adj_in_ref[...]                                        # bf16
        adj_o = adj_out_ref[...]

        def gcn_rest(adj, h1_blk, b1, w2_ref, b2_ref):
            h = jnp.dot(adj, h1_blk.astype(bf16), preferred_element_type=f32) + b1
            h = jnp.maximum(h, 0.0)        # ReLU; dropout = identity (eval mode)
            s = jnp.dot(h.astype(bf16), w2_ref[...], preferred_element_type=f32)
            return jnp.dot(adj, s.astype(bf16), preferred_element_type=f32) + b2_ref[...]
            # TODO(synk): add log_softmax here iff the source GCN applies it.

        q_in = gcn_rest(adj_i, h1[:, :E], b1i_ref[...], w2i_ref, b2i_ref)    # [N, E2]
        q_out = gcn_rest(adj_o, h1[:, E:], b1o_ref[...], w2o_ref, b2o_ref)   # [N, E2]

        # x_d = x @ cat([q_in, q_out], -1) kept as two column blocks (no lane concat).
        x_b = x_ref[...]                                               # [T*B, N] bf16
        u_in = jnp.dot(x_b, q_in.astype(bf16), preferred_element_type=f32)   # [T*B, E2]
        u_out = jnp.dot(x_b, q_out.astype(bf16), preferred_element_type=f32)

        unroll = True if T <= 16 else 8
        hs2d = None                                                    # [T*B, H] time-major

        for l in range(L):
            if l == 0:
                wia_ref, wib_ref, whh_ref, bfold_ref, bhn_ref = gru_refs[0]
                # fused per-layer input projection: one matmul per column block,
                # all 3 gates (r,z,n) on the lane axis; b_hr/b_hz already folded in.
                gi = (jnp.dot(u_in.astype(bf16), wia_ref[...], preferred_element_type=f32)
                      + jnp.dot(u_out.astype(bf16), wib_ref[...], preferred_element_type=f32)
                      + bfold_ref[...])                                # [T*B, 3H]
            else:
                wih_ref, whh_ref, bfold_ref, bhn_ref = gru_refs[l]
                gi = (jnp.dot(hs2d.astype(bf16), wih_ref[...], preferred_element_type=f32)
                      + bfold_ref[...])                                # [T*B, 3H]

            # ONE whole-ref store (time-major rows -> [T, B, 3H]); no per-t slicing.
            gi_scr[...] = gi.reshape(T, B, H3)

            whh = whh_ref[...]                                         # [H, 3H] bf16
            bhn = jnp.broadcast_to(bhn_ref[...], (B, H))               # hoisted broadcast

            def step(t, h):
                # One fused recurrent matmul per step; gate splits are in-vreg lane slices.
                gh = jnp.dot(h.astype(bf16), whh, preferred_element_type=f32)   # [B, 3H]
                gi_t = gi_scr[t]                                                # [B, 3H]
                rz = jax.nn.sigmoid(gi_t[:, :2 * H] + gh[:, :2 * H])
                r = rz[:, :H]
                z = rz[:, H:]
                n = jnp.tanh(gi_t[:, 2 * H:] + r * (gh[:, 2 * H:] + bhn))
                h_new = n + z * (h - n)          # == (1 - z) * n + z * h
                hseq_scr[t] = h_new
                return h_new

            lax.fori_loop(0, T, step, jnp.zeros((B, H), f32), unroll=unroll)

            # Next layer / epilogue consume the sequence time-major, no relayout loop.
            hs2d = hseq_scr[...].reshape(T * B, H)

        # -------- lane-dense packed epilogue: cols 0:Q logits, Q:Q+H hidden --------
        # fcw is [H, 128] = [W_fc | I_H | 0] (f32, exact), so one matmul produces both
        # outputs and the store is a full-128-lane unmasked store.
        out_ref[...] = (jnp.dot(hs2d, fcw_ref[...], preferred_element_type=f32)
                        + fcb_ref[...]).astype(out_ref.dtype)

    return kernel


# ----------------------------- module wrapper --------------------------------
def transition_graph_forward(params, ques, x):
    B, T, N = x.shape
    E = ques.shape[1]
    H = params["gru"][0][2].shape[0]          # whh: [H, 3H]
    Q = NUM_OF_QUESTIONS
    L = len(params["gru"])

    # Time-major rows (row = t*B + b): kills all in-kernel batch/time relayout.
    x_tm = jnp.transpose(x, (1, 0, 2)).reshape(T * B, N).astype(jnp.bfloat16)
    ques_b = ques.astype(jnp.bfloat16)

    inputs = [ques_b, params["adj_in"], params["adj_out"],
              params["gcn_w1_cat"], params["gcn_b1_in"], params["gcn_b1_out"],
              params["gcn_w2_in"], params["gcn_b2_in"],
              params["gcn_w2_out"], params["gcn_b2_out"],
              x_tm]
    for layer in params["gru"]:
        inputs.extend(layer)
    inputs.extend([params["fc_pack_w"], params["fc_pack_b"]])

    vmem = pl.BlockSpec(memory_space=pltpu.MemorySpace.VMEM)
    slab = pl.pallas_call(
        build_kernel(B, T, N, E, H, Q, L),
        out_shape=jax.ShapeDtypeStruct((T * B, PACK), jnp.float32),
        in_specs=[vmem] * len(inputs),
        out_specs=vmem,
        scratch_shapes=[pltpu.VMEM((T, B, 3 * H), jnp.float32),
                        pltpu.VMEM((T, B, H), jnp.float32)],
        compiler_params=pltpu.CompilerParams(vmem_limit_bytes=32 * 1024 * 1024),
    )(*inputs)

    # Single cheap XLA transpose back to batch_first, then slice the packed lanes.
    slab = slab.reshape(T, B, PACK).transpose(1, 0, 2)                 # [B, T, 128]
    logit_d = slab[..., :Q]
    out_d = slab[..., Q:Q + H]
    return logit_d, out_d


# ----------------------------- parameter setup --------------------------------
def init_params(key, emb_dim, hidden_dim, layer_dim, n_nodes):
    E, H, L, N = emb_dim, hidden_dim, layer_dim, n_nodes
    E2, H3 = E // 2, 3 * hidden_dim
    Q = NUM_OF_QUESTIONS
    assert Q + H <= PACK, "packed output requires Q + H <= 128"
    ks = iter(jax.random.split(key, 64))
    s = 0.1
    f32, bf16 = jnp.float32, jnp.bfloat16

    def rn(shape):
        return (s * jax.random.normal(next(ks), shape)).astype(f32)

    # GCN branch raw params: gc1 (E -> E), gc2 (E -> E/2); biases stored [1, D].
    def gcn_raw():
        return rn((E, E)), rn((1, E)), rn((E, E2)), rn((1, E2))

    wi1, bi1, wi2, bi2 = gcn_raw()   # GCN_in
    wo1, bo1, wo2, bo2 = gcn_raw()   # GCN_out

    # Synthetic row-normalized adjacencies (module buffers) -> bf16 MXU operands.
    adj_out = jax.nn.softmax(jax.random.normal(next(ks), (N, N)), axis=-1)
    adj_in = jax.nn.softmax(jax.random.normal(next(ks), (N, N)), axis=-1)

    # GRU params pre-transposed for right-multiplication, gates (r, z, n) concatenated
    # on the lane axis: W_ih^T [in, 3H], W_hh^T [H, 3H].  b_hr/b_hz are folded into the
    # hoisted gate-input bias ONCE here; b_hn stays separate (PyTorch GRU semantics).
    gru = []
    in_size = E
    for l in range(L):
        wih = rn((in_size, H3))
        whh = rn((H, H3))
        bih = rn((1, H3))
        bhh = rn((1, H3))
        bfold = bih.at[:, :2 * H].add(bhh[:, :2 * H])
        bhn = bhh[:, 2 * H:]
        if l == 0:
            # split layer-0 W_ih by the (q_in | q_out) column blocks of x_d
            layer = (wih[:E2].astype(bf16), wih[E2:].astype(bf16),
                     whh.astype(bf16), bfold, bhn)
        else:
            layer = (wih.astype(bf16), whh.astype(bf16), bfold, bhn)
        gru.append(layer)
        in_size = H

    # fc packed with an identity block: cols 0:Q = fc(out), cols Q:Q+H = out (exact),
    # rest zero -> one matmul, one unmasked full-lane store.
    fc_w_t = rn((H, Q))
    fc_b = rn((1, Q))
    fc_pack_w = (jnp.zeros((H, PACK), f32)
                 .at[:, :Q].set(fc_w_t)
                 .at[:, Q:Q + H].set(jnp.eye(H, dtype=f32)))
    fc_pack_b = jnp.zeros((1, PACK), f32).at[:, :Q].set(fc_b)

    return {
        "adj_in": adj_in.astype(bf16),
        "adj_out": adj_out.astype(bf16),
        "gcn_w1_cat": jnp.concatenate([wi1, wo1], axis=1).astype(bf16),  # [E, 2E]
        "gcn_b1_in": bi1, "gcn_b1_out": bo1,
        "gcn_w2_in": wi2.astype(bf16), "gcn_b2_in": bi2,
        "gcn_w2_out": wo2.astype(bf16), "gcn_b2_out": bo2,
        "gru": gru,
        "fc_pack_w": fc_pack_w,
        "fc_pack_b": fc_pack_b,
    }


if __name__ == "__main__":
    emb_dim, hidden_dim, layer_dim = 32, 32, 2
    B, T, N = 2, 8, NUM_OF_QUESTIONS

    key = jax.random.PRNGKey(0)
    kp, kq, kx = jax.random.split(key, 3)
    params = init_params(kp, emb_dim, hidden_dim, layer_dim, N)

    ques = jax.random.normal(kq, (N, emb_dim), dtype=jnp.float32)
    x = jax.random.normal(kx, (B, T, N), dtype=jnp.float32)

    fwd = jax.jit(transition_graph_forward)
    logit_d, out_d = fwd(params, ques, x)
    jax.block_until_ready((logit_d, out_d))

    assert logit_d.shape == (B, T, NUM_OF_QUESTIONS)
    assert out_d.shape == (B, T, hidden_dim)
    print("KERNEL_OK")
</pallas_src>

<mosaic_0001>
module attributes {stable_mosaic.version = 11 : i64} {
  func.func @kernel(%arg0: memref<16x32xbf16, #tpu.memory_space<vmem>>, %arg1: memref<16x16xbf16, #tpu.memory_space<vmem>>, %arg2: memref<16x16xbf16, #tpu.memory_space<vmem>>, %arg3: memref<32x64xbf16, #tpu.memory_space<vmem>>, %arg4: memref<1x32xf32, #tpu.memory_space<vmem>>, %arg5: memref<1x32xf32, #tpu.memory_space<vmem>>, %arg6: memref<32x16xbf16, #tpu.memory_space<vmem>>, %arg7: memref<1x16xf32, #tpu.memory_space<vmem>>, %arg8: memref<32x16xbf16, #tpu.memory_space<vmem>>, %arg9: memref<1x16xf32, #tpu.memory_space<vmem>>, %arg10: memref<16x16xbf16, #tpu.memory_space<vmem>>, %arg11: memref<16x96xbf16, #tpu.memory_space<vmem>>, %arg12: memref<16x96xbf16, #tpu.memory_space<vmem>>, %arg13: memref<32x96xbf16, #tpu.memory_space<vmem>>, %arg14: memref<1x96xf32, #tpu.memory_space<vmem>>, %arg15: memref<1x32xf32, #tpu.memory_space<vmem>>, %arg16: memref<32x96xbf16, #tpu.memory_space<vmem>>, %arg17: memref<32x96xbf16, #tpu.memory_space<vmem>>, %arg18: memref<1x96xf32, #tpu.memory_space<vmem>>, %arg19: memref<1x32xf32, #tpu.memory_space<vmem>>, %arg20: memref<32x128xf32, #tpu.memory_space<vmem>>, %arg21: memref<1x128xf32, #tpu.memory_space<vmem>>, %arg22: memref<16x128xf32, #tpu.memory_space<vmem>>, %arg23: memref<8x2x96xf32, #tpu.memory_space<vmem>>, %arg24: memref<8x2x32xf32, #tpu.memory_space<vmem>>) attributes {dimension_semantics = [], scalar_prefetch = 0 : i64, scratch_operands = 2 : i64, tpu.core_type = #tpu.core_type<tc>} {
    %c0 = arith.constant 0 : index
    %c0_0 = arith.constant 0 : index
    %0 = vector.load %arg0[%c0, %c0_0] : memref<16x32xbf16, #tpu.memory_space<vmem>>, vector<16x32xbf16>
    %c0_1 = arith.constant 0 : index
    %c0_2 = arith.constant 0 : index
    %1 = vector.load %arg3[%c0_1, %c0_2] : memref<32x64xbf16, #tpu.memory_space<vmem>>, vector<32x64xbf16>
    %cst = arith.constant dense<0.000000e+00> : vector<16x64xf32>
    %2 = tpu.matmul %0, %1, %cst {dimension_numbers = #tpu.dot_dimension_numbers<[1], [0], [0], [1], [0, 0, 1, 1], [], []>} : vector<16x32xbf16>, vector<32x64xbf16>, vector<16x64xf32> -> vector<16x64xf32>
    %c0_3 = arith.constant 0 : index
    %c0_4 = arith.constant 0 : index
    %3 = vector.load %arg1[%c0_3, %c0_4] : memref<16x16xbf16, #tpu.memory_space<vmem>>, vector<16x16xbf16>
    %c0_5 = arith.constant 0 : index
    %c0_6 = arith.constant 0 : index
    %4 = vector.load %arg2[%c0_5, %c0_6] : memref<16x16xbf16, #tpu.memory_space<vmem>>, vector<16x16xbf16>
    %5 = vector.extract_strided_slice %2 {offsets = [0, 0], sizes = [16, 32], strides = [1, 1]} : vector<16x64xf32> to vector<16x32xf32>
    %c0_7 = arith.constant 0 : index
    %c0_8 = arith.constant 0 : index
    %6 = vector.load %arg4[%c0_7, %c0_8] : memref<1x32xf32, #tpu.memory_space<vmem>>, vector<1x32xf32>
    %7 = arith.truncf %5 : vector<16x32xf32> to vector<16x32xbf16>
    %cst_9 = arith.constant dense<0.000000e+00> : vector<16x32xf32>
    %8 = tpu.matmul %3, %7, %cst_9 {dimension_numbers = #tpu.dot_dimension_numbers<[1], [0], [0], [1], [0, 0, 1, 1], [], []>} : vector<16x16xbf16>, vector<16x32xbf16>, vector<16x32xf32> -> vector<16x32xf32>
    %9 = vector.broadcast %6 : vector<1x32xf32> to vector<16x32xf32>
    %10 = arith.addf %8, %9 : vector<16x32xf32>
    %cst_10 = arith.constant 0.000000e+00 : f32
    %11 = vector.broadcast %cst_10 : f32 to vector<16x32xf32>
    %12 = arith.maximumf %10, %11 : vector<16x32xf32>
    %13 = arith.truncf %12 : vector<16x32xf32> to vector<16x32xbf16>
    %c0_11 = arith.constant 0 : index
    %c0_12 = arith.constant 0 : index
    %14 = vector.load %arg6[%c0_11, %c0_12] : memref<32x16xbf16, #tpu.memory_space<vmem>>, vector<32x16xbf16>
    %cst_13 = arith.constant dense<0.000000e+00> : vector<16x16xf32>
    %15 = tpu.matmul %13, %14, %cst_13 {dimension_numbers = #tpu.dot_dimension_numbers<[1], [0], [0], [1], [0, 0, 1, 1], [], []>} : vector<16x32xbf16>, vector<32x16xbf16>, vector<16x16xf32> -> vector<16x16xf32>
    %16 = arith.truncf %15 : vector<16x16xf32> to vector<16x16xbf16>
    %cst_14 = arith.constant dense<0.000000e+00> : vector<16x16xf32>
    %17 = tpu.matmul %3, %16, %cst_14 {dimension_numbers = #tpu.dot_dimension_numbers<[1], [0], [0], [1], [0, 0, 1, 1], [], []>} : vector<16x16xbf16>, vector<16x16xbf16>, vector<16x16xf32> -> vector<16x16xf32>
    %c0_15 = arith.constant 0 : index
    %c0_16 = arith.constant 0 : index
    %18 = vector.load %arg7[%c0_15, %c0_16] : memref<1x16xf32, #tpu.memory_space<vmem>>, vector<1x16xf32>
    %19 = vector.broadcast %18 : vector<1x16xf32> to vector<16x16xf32>
    %20 = arith.addf %17, %19 : vector<16x16xf32>
    %21 = vector.extract_strided_slice %2 {offsets = [0, 32], sizes = [16, 32], strides = [1, 1]} : vector<16x64xf32> to vector<16x32xf32>
    %c0_17 = arith.constant 0 : index
    %c0_18 = arith.constant 0 : index
    %22 = vector.load %arg5[%c0_17, %c0_18] : memref<1x32xf32, #tpu.memory_space<vmem>>, vector<1x32xf32>
    %23 = arith.truncf %21 : vector<16x32xf32> to vector<16x32xbf16>
    %cst_19 = arith.constant dense<0.000000e+00> : vector<16x32xf32>
    %24 = tpu.matmul %4, %23, %cst_19 {dimension_numbers = #tpu.dot_dimension_numbers<[1], [0], [0], [1], [0, 0, 1, 1], [], []>} : vector<16x16xbf16>, vector<16x32xbf16>, vector<16x32xf32> -> vector<16x32xf32>
    %25 = vector.broadcast %22 : vector<1x32xf32> to vector<16x32xf32>
    %26 = arith.addf %24, %25 : vector<16x32xf32>
    %cst_20 = arith.constant 0.000000e+00 : f32
    %27 = vector.broadcast %cst_20 : f32 to vector<16x32xf32>
    %28 = arith.maximumf %26, %27 : vector<16x32xf32>
    %29 = arith.truncf %28 : vector<16x32xf32> to vector<16x32xbf16>
    %c0_21 = arith.constant 0 : index
    %c0_22 = arith.constant 0 : index
    %30 = vector.load %arg8[%c0_21, %c0_22] : memref<32x16xbf16, #tpu.memory_space<vmem>>, vector<32x16xbf16>
    %cst_23 = arith.constant dense<0.000000e+00> : vector<16x16xf32>
    %31 = tpu.matmul %29, %30, %cst_23 {dimension_numbers = #tpu.dot_dimension_numbers<[1], [0], [0], [1], [0, 0, 1, 1], [], []>} : vector<16x32xbf16>, vector<32x16xbf16>, vector<16x16xf32> -> vector<16x16xf32>
    %32 = arith.truncf %31 : vector<16x16xf32> to vector<16x16xbf16>
    %cst_24 = arith.constant dense<0.000000e+00> : vector<16x16xf32>
    %33 = tpu.matmul %4, %32, %cst_24 {dimension_numbers = #tpu.dot_dimension_numbers<[1], [0], [0], [1], [0, 0, 1, 1], [], []>} : vector<16x16xbf16>, vector<16x16xbf16>, vector<16x16xf32> -> vector<16x16xf32>
    %c0_25 = arith.constant 0 : index
    %c0_26 = arith.constant 0 : index
    %34 = vector.load %arg9[%c0_25, %c0_26] : memref<1x16xf32, #tpu.memory_space<vmem>>, vector<1x16xf32>
    %35 = vector.broadcast %34 : vector<1x16xf32> to vector<16x16xf32>
    %36 = arith.addf %33, %35 : vector<16x16xf32>
    %c0_27 = arith.constant 0 : index
    %c0_28 = arith.constant 0 : index
    %37 = vector.load %arg10[%c0_27, %c0_28] : memref<16x16xbf16, #tpu.memory_space<vmem>>, vector<16x16xbf16>
    %38 = arith.truncf %20 : vector<16x16xf32> to vector<16x16xbf16>
    %cst_29 = arith.constant dense<0.000000e+00> : vector<16x16xf32>
    %39 = tpu.matmul %37, %38, %cst_29 {dimension_numbers = #tpu.dot_dimension_numbers<[1], [0], [0], [1], [0, 0, 1, 1], [], []>} : vector<16x16xbf16>, vector<16x16xbf16>, vector<16x16xf32> -> vector<16x16xf32>
    %40 = arith.truncf %36 : vector<16x16xf32> to vector<16x16xbf16>
    %cst_30 = arith.constant dense<0.000000e+00> : vector<16x16xf32>
    %41 = tpu.matmul %37, %40, %cst_30 {dimension_numbers = #tpu.dot_dimension_numbers<[1], [0], [0], [1], [0, 0, 1, 1], [], []>} : vector<16x16xbf16>, vector<16x16xbf16>, vector<16x16xf32> -> vector<16x16xf32>
    %42 = arith.truncf %39 : vector<16x16xf32> to vector<16x16xbf16>
    %c0_31 = arith.constant 0 : index
    %c0_32 = arith.constant 0 : index
    %43 = vector.load %arg11[%c0_31, %c0_32] : memref<16x96xbf16, #tpu.memory_space<vmem>>, vector<16x96xbf16>
    %cst_33 = arith.constant dense<0.000000e+00> : vector<16x96xf32>
    %44 = tpu.matmul %42, %43, %cst_33 {dimension_numbers = #tpu.dot_dimension_numbers<[1], [0], [0], [1], [0, 0, 1, 1], [], []>} : vector<16x16xbf16>, vector<16x96xbf16>, vector<16x96xf32> -> vector<16x96xf32>
    %45 = arith.truncf %41 : vector<16x16xf32> to vector<16x16xbf16>
    %c0_34 = arith.constant 0 : index
    %c0_35 = arith.constant 0 : index
    %46 = vector.load %arg12[%c0_34, %c0_35] : memref<16x96xbf16, #tpu.memory_space<vmem>>, vector<16x96xbf16>
    %cst_36 = arith.constant dense<0.000000e+00> : vector<16x96xf32>
    %47 = tpu.matmul %45, %46, %cst_36 {dimension_numbers = #tpu.dot_dimension_numbers<[1], [0], [0], [1], [0, 0, 1, 1], [], []>} : vector<16x16xbf16>, vector<16x96xbf16>, vector<16x96xf32> -> vector<16x96xf32>
    %48 = arith.addf %44, %47 : vector<16x96xf32>
    %c0_37 = arith.constant 0 : index
    %c0_38 = arith.constant 0 : index
    %49 = vector.load %arg14[%c0_37, %c0_38] : memref<1x96xf32, #tpu.memory_space<vmem>>, vector<1x96xf32>
    %50 = vector.broadcast %49 : vector<1x96xf32> to vector<16x96xf32>
    %51 = arith.addf %48, %50 : vector<16x96xf32>
    %52 = vector.shape_cast %51 : vector<16x96xf32> to vector<8x2x96xf32>
    %c0_39 = arith.constant 0 : index
    %c0_40 = arith.constant 0 : index
    %c0_41 = arith.constant 0 : index
    %53 = vector.load %arg23[%c0_39, %c0_40, %c0_41] : memref<8x2x96xf32, #tpu.memory_space<vmem>>, vector<8x2x96xf32>
    tpu.vector_store %arg23[%c0_39, %c0_40, %c0_41], %52 {strides = array<i32>} : memref<8x2x96xf32, #tpu.memory_space<vmem>>, vector<8x2x96xf32>,
    %c0_42 = arith.constant 0 : index
    %c0_43 = arith.constant 0 : index
    %54 = vector.load %arg13[%c0_42, %c0_43] : memref<32x96xbf16, #tpu.memory_space<vmem>>, vector<32x96xbf16>
    %c0_44 = arith.constant 0 : index
    %c0_45 = arith.constant 0 : index
    %55 = vector.load %arg15[%c0_44, %c0_45] : memref<1x32xf32, #tpu.memory_space<vmem>>, vector<1x32xf32>
    %56 = vector.shape_cast %55 : vector<1x32xf32> to vector<1x32xf32>
    %57 = vector.broadcast %56 : vector<1x32xf32> to vector<2x32xf32>
    %cst_46 = arith.constant 0.000000e+00 : f32
    %58 = vector.broadcast %cst_46 : f32 to vector<2x32xf32>
    %c0_i32 = arith.constant 0 : i32
    %59 = arith.truncf %58 : vector<2x32xf32> to vector<2x32xbf16>
    %cst_47 = arith.constant dense<0.000000e+00> : vector<2x96xf32>
    %60 = tpu.matmul %59, %54, %cst_47 {dimension_numbers = #tpu.dot_dimension_numbers<[1], [0], [0], [1], [0, 0, 1, 1], [], []>} : vector<2x32xbf16>, vector<32x96xbf16>, vector<2x96xf32> -> vector<2x96xf32>
    %61 = arith.index_cast %c0_i32 : i32 to index
    %c0_48 = arith.constant 0 : index
    %c0_49 = arith.constant 0 : index
    %62 = vector.load %arg23[%61, %c0_48, %c0_49] : memref<8x2x96xf32, #tpu.memory_space<vmem>>, vector<1x2x96xf32>
    %63 = vector.shape_cast %62 : vector<1x2x96xf32> to vector<2x96xf32>
    %64 = vector.extract_strided_slice %63 {offsets = [0, 0], sizes = [2, 64], strides = [1, 1]} : vector<2x96xf32> to vector<2x64xf32>
    %65 = vector.extract_strided_slice %60 {offsets = [0, 0], sizes = [2, 64], strides = [1, 1]} : vector<2x96xf32> to vector<2x64xf32>
    %66 = arith.addf %64, %65 : vector<2x64xf32>
    %67 = arith.negf %66 : vector<2x64xf32>
    %68 = math.exp %67 : vector<2x64xf32>
    %cst_50 = arith.constant 1.000000e+00 : f32
    %69 = vector.broadcast %cst_50 : f32 to vector<2x64xf32>
    %70 = arith.addf %69, %68 : vector<2x64xf32>
    %71 = arith.divf %69, %70 : vector<2x64xf32>
    %72 = vector.extract_strided_slice %71 {offsets = [0, 0], sizes = [2, 32], strides = [1, 1]} : vector<2x64xf32> to vector<2x32xf32>
    %73 = vector.extract_strided_slice %71 {offsets = [0, 32], sizes = [2, 32], strides = [1, 1]} : vector<2x64xf32> to vector<2x32xf32>
    %74 = vector.extract_strided_slice %63 {offsets = [0, 64], sizes = [2, 32], strides = [1, 1]} : vector<2x96xf32> to vector<2x32xf32>
    %75 = vector.extract_strided_slice %60 {offsets = [0, 64], sizes = [2, 32], strides = [1, 1]} : vector<2x96xf32> to vector<2x32xf32>
    %76 = arith.addf %75, %57 : vector<2x32xf32>
    %77 = arith.mulf %72, %76 : vector<2x32xf32>
    %78 = arith.addf %74, %77 : vector<2x32xf32>
    %79 = math.tanh %78 : vector<2x32xf32>
    %80 = arith.subf %58, %79 : vector<2x32xf32>
    %81 = arith.mulf %73, %80 : vector<2x32xf32>
    %82 = arith.addf %79, %81 : vector<2x32xf32>
    %83 = arith.index_cast %c0_i32 : i32 to index
    %c0_51 = arith.constant 0 : index
    %c0_52 = arith.constant 0 : index
    %84 = vector.load %arg24[%83, %c0_51, %c0_52] : memref<8x2x32xf32, #tpu.memory_space<vmem>>, vector<1x2x32xf32>
    %85 = vector.shape_cast %84 : vector<1x2x32xf32> to vector<2x32xf32>
    %86 = vector.shape_cast %82 : vector<2x32xf32> to vector<1x2x32xf32>
    tpu.vector_store %arg24[%83, %c0_51, %c0_52], %86 {strides = array<i32>} : memref<8x2x32xf32, #tpu.memory_space<vmem>>, vector<1x2x32xf32>,
    %c1_i32 = arith.constant 1 : i32
    %87 = arith.truncf %82 : vector<2x32xf32> to vector<2x32xbf16>
    %cst_53 = arith.constant dense<0.000000e+00> : vector<2x96xf32>
    %88 = tpu.matmul %87, %54, %cst_53 {dimension_numbers = #tpu.dot_dimension_numbers<[1], [0], [0], [1], [0, 0, 1, 1], [], []>} : vector<2x32xbf16>, vector<32x96xbf16>, vector<2x96xf32> -> vector<2x96xf32>
    %89 = arith.index_cast %c1_i32 : i32 to index
    %c0_54 = arith.constant 0 : index
    %c0_55 = arith.constant 0 : index
    %90 = vector.load %arg23[%89, %c0_54, %c0_55] : memref<8x2x96xf32, #tpu.memory_space<vmem>>, vector<1x2x96xf32>
    %91 = vector.shape_cast %90 : vector<1x2x96xf32> to vector<2x96xf32>
    %92 = vector.extract_strided_slice %91 {offsets = [0, 0], sizes = [2, 64], strides = [1, 1]} : vector<2x96xf32> to vector<2x64xf32>
    %93 = vector.extract_strided_slice %88 {offsets = [0, 0], sizes = [2, 64], strides = [1, 1]} : vector<2x96xf32> to vector<2x64xf32>
    %94 = arith.addf %92, %93 : vector<2x64xf32>
    %95 = arith.negf %94 : vector<2x64xf32>
    %96 = math.exp %95 : vector<2x64xf32>
    %cst_56 = arith.constant 1.000000e+00 : f32
    %97 = vector.broadcast %cst_56 : f32 to vector<2x64xf32>
    %98 = arith.addf %97, %96 : vector<2x64xf32>
    %99 = arith.divf %97, %98 : vector<2x64xf32>
    %100 = vector.extract_strided_slice %99 {offsets = [0, 0], sizes = [2, 32], strides = [1, 1]} : vector<2x64xf32> to vector<2x32xf32>
    %101 = vector.extract_strided_slice %99 {offsets = [0, 32], sizes = [2, 32], strides = [1, 1]} : vector<2x64xf32> to vector<2x32xf32>
    %102 = vector.extract_strided_slice %91 {offsets = [0, 64], sizes = [2, 32], strides = [1, 1]} : vector<2x96xf32> to vector<2x32xf32>
    %103 = vector.extract_strided_slice %88 {offsets = [0, 64], sizes = [2, 32], strides = [1, 1]} : vector<2x96xf32> to vector<2x32xf32>
    %104 = arith.addf %103, %57 : vector<2x32xf32>
    %105 = arith.mulf %100, %104 : vector<2x32xf32>
    %106 = arith.addf %102, %105 : vector<2x32xf32>
    %107 = math.tanh %106 : vector<2x32xf32>
    %108 = arith.subf %82, %107 : vector<2x32xf32>
    %109 = arith.mulf %101, %108 : vector<2x32xf32>
    %110 = arith.addf %107, %109 : vector<2x32xf32>
    %111 = arith.index_cast %c1_i32 : i32 to index
    %c0_57 = arith.constant 0 : index
    %c0_58 = arith.constant 0 : index
    %112 = vector.load %arg24[%111, %c0_57, %c0_58] : memref<8x2x32xf32, #tpu.memory_space<vmem>>, vector<1x2x32xf32>
    %113 = vector.shape_cast %112 : vector<1x2x32xf32> to vector<2x32xf32>
    %114 = vector.shape_cast %110 : vector<2x32xf32> to vector<1x2x32xf32>
    tpu.vector_store %arg24[%111, %c0_57, %c0_58], %114 {strides = array<i32>} : memref<8x2x32xf32, #tpu.memory_space<vmem>>, vector<1x2x32xf32>,
    %c2_i32 = arith.constant 2 : i32
    %115 = arith.truncf %110 : vector<2x32xf32> to vector<2x32xbf16>
    %cst_59 = arith.constant dense<0.000000e+00> : vector<2x96xf32>
    %116 = tpu.matmul %115, %54, %cst_59 {dimension_numbers = #tpu.dot_dimension_numbers<[1], [0], [0], [1], [0, 0, 1, 1], [], []>} : vector<2x32xbf16>, vector<32x96xbf16>, vector<2x96xf32> -> vector<2x96xf32>
    %117 = arith.index_cast %c2_i32 : i32 to index
    %c0_60 = arith.constant 0 : index
    %c0_61 = arith.constant 0 : index
    %118 = vector.load %arg23[%117, %c0_60, %c0_61] : memref<8x2x96xf32, #tpu.memory_space<vmem>>, vector<1x2x96xf32>
    %119 = vector.shape_cast %118 : vector<1x2x96xf32> to vector<2x96xf32>
    %120 = vector.extract_strided_slice %119 {offsets = [0, 0], sizes = [2, 64], strides = [1, 1]} : vector<2x96xf32> to vector<2x64xf32>
    %121 = vector.extract_strided_slice %116 {offsets = [0, 0], sizes = [2, 64], strides = [1, 1]} : vector<2x96xf32> to vector<2x64xf32>
    %122 = arith.addf %120, %121 : vector<2x64xf32>
    %123 = arith.negf %122 : vector<2x64xf32>
    %124 = math.exp %123 : vector<2x64xf32>
    %cst_62 = arith.constant 1.000000e+00 : f32
    %125 = vector.broadcast %cst_62 : f32 to vector<2x64xf32>
    %126 = arith.addf %125, %124 : vector<2x64xf32>
    %127 = arith.divf %125, %126 : vector<2x64xf32>
    %128 = vector.extract_strided_slice %127 {offsets = [0, 0], sizes = [2, 32], strides = [1, 1]} : vector<2x64xf32> to vector<2x32xf32>
    %129 = vector.extract_strided_slice %127 {offsets = [0, 32], sizes = [2, 32], strides = [1, 1]} : vector<2x64xf32> to vector<2x32xf32>
    %130 = vector.extract_strided_slice %119 {offsets = [0, 64], sizes = [2, 32], strides = [1, 1]} : vector<2x96xf32> to vector<2x32xf32>
    %131 = vector.extract_strided_slice %116 {offsets = [0, 64], sizes = [2, 32], strides = [1, 1]} : vector<2x96xf32> to vector<2x32xf32>
    %132 = arith.addf %131, %57 : vector<2x32xf32>
    %133 = arith.mulf %128, %132 : vector<2x32xf32>
    %134 = arith.addf %130, %133 : vector<2x32xf32>
    %135 = math.tanh %134 : vector<2x32xf32>
    %136 = arith.subf %110, %135 : vector<2x32xf32>
    %137 = arith.mulf %129, %136 : vector<2x32xf32>
    %138 = arith.addf %135, %137 : vector<2x32xf32>
    %139 = arith.index_cast %c2_i32 : i32 to index
    %c0_63 = arith.constant 0 : index
    %c0_64 = arith.constant 0 : index
    %140 = vector.load %arg24[%139, %c0_63, %c0_64] : memref<8x2x32xf32, #tpu.memory_space<vmem>>, vector<1x2x32xf32>
    %141 = vector.shape_cast %140 : vector<1x2x32xf32> to vector<2x32xf32>
    %142 = vector.shape_cast %138 : vector<2x32xf32> to vector<1x2x32xf32>
    tpu.vector_store %arg24[%139, %c0_63, %c0_64], %142 {strides = array<i32>} : memref<8x2x32xf32, #tpu.memory_space<vmem>>, vector<1x2x32xf32>,
    %c3_i32 = arith.constant 3 : i32
    %143 = arith.truncf %138 : vector<2x32xf32> to vector<2x32xbf16>
    %cst_65 = arith.constant dense<0.000000e+00> : vector<2x96xf32>
    %144 = tpu.matmul %143, %54, %cst_65 {dimension_numbers = #tpu.dot_dimension_numbers<[1], [0], [0], [1], [0, 0, 1, 1], [], []>} : vector<2x32xbf16>, vector<32x96xbf16>, vector<2x96xf32> -> vector<2x96xf32>
    %145 = arith.index_cast %c3_i32 : i32 to index
    %c0_66 = arith.constant 0 : index
    %c0_67 = arith.constant 0 : index
    %146 = vector.load %arg23[%145, %c0_66, %c0_67] : memref<8x2x96xf32, #tpu.memory_space<vmem>>, vector<1x2x96xf32>
    %147 = vector.shape_cast %146 : vector<1x2x96xf32> to vector<2x96xf32>
    %148 = vector.extract_strided_slice %147 {offsets = [0, 0], sizes = [2, 64], strides = [1, 1]} : vector<2x96xf32> to vector<2x64xf32>
    %149 = vector.extract_strided_slice %144 {offsets = [0, 0], sizes = [2, 64], strides = [1, 1]} : vector<2x96xf32> to vector<2x64xf32>
    %150 = arith.addf %148, %149 : vector<2x64xf32>
    %151 = arith.negf %150 : vector<2x64xf32>
    %152 = math.exp %151 : vector<2x64xf32>
    %cst_68 = arith.constant 1.000000e+00 : f32
    %153 = vector.broadcast %cst_68 : f32 to vector<2x64xf32>
    %154 = arith.addf %153, %152 : vector<2x64xf32>
    %155 = arith.divf %153, %154 : vector<2x64xf32>
    %156 = vector.extract_strided_slice %155 {offsets = [0, 0], sizes = [2, 32], strides = [1, 1]} : vector<2x64xf32> to vector<2x32xf32>
    %157 = vector.extract_strided_slice %155 {offsets = [0, 32], sizes = [2, 32], strides = [1, 1]} : vector<2x64xf32> to vector<2x32xf32>
    %158 = vector.extract_strided_slice %147 {offsets = [0, 64], sizes = [2, 32], strides = [1, 1]} : vector<2x96xf32> to vector<2x32xf32>
    %159 = vector.extract_strided_slice %144 {offsets = [0, 64], sizes = [2, 32], strides = [1, 1]} : vector<2x96xf32> to vector<2x32xf32>
    %160 = arith.addf %159, %57 : vector<2x32xf32>
    %161 = arith.mulf %156, %160 : vector<2x32xf32>
    %162 = arith.addf %158, %161 : vector<2x32xf32>
    %163 = math.tanh %162 : vector<2x32xf32>
    %164 = arith.subf %138, %163 : vector<2x32xf32>
    %165 = arith.mulf %157, %164 : vector<2x32xf32>
    %166 = arith.addf %163, %165 : vector<2x32xf32>
    %167 = arith.index_cast %c3_i32 : i32 to index
    %c0_69 = arith.constant 0 : index
    %c0_70 = arith.constant 0 : index
    %168 = vector.load %arg24[%167, %c0_69, %c0_70] : memref<8x2x32xf32, #tpu.memory_space<vmem>>, vector<1x2x32xf32>
    %169 = vector.shape_cast %168 : vector<1x2x32xf32> to vector<2x32xf32>
    %170 = vector.shape_cast %166 : vector<2x32xf32> to vector<1x2x32xf32>
    tpu.vector_store %arg24[%167, %c0_69, %c0_70], %170 {strides = array<i32>} : memref<8x2x32xf32, #tpu.memory_space<vmem>>, vector<1x2x32xf32>,
    %c4_i32 = arith.constant 4 : i32
    %171 = arith.truncf %166 : vector<2x32xf32> to vector<2x32xbf16>
    %cst_71 = arith.constant dense<0.000000e+00> : vector<2x96xf32>
    %172 = tpu.matmul %171, %54, %cst_71 {dimension_numbers = #tpu.dot_dimension_numbers<[1], [0], [0], [1], [0, 0, 1, 1], [], []>} : vector<2x32xbf16>, vector<32x96xbf16>, vector<2x96xf32> -> vector<2x96xf32>
    %173 = arith.index_cast %c4_i32 : i32 to index
    %c0_72 = arith.constant 0 : index
    %c0_73 = arith.constant 0 : index
    %174 = vector.load %arg23[%173, %c0_72, %c0_73] : memref<8x2x96xf32, #tpu.memory_space<vmem>>, vector<1x2x96xf32>
    %175 = vector.shape_cast %174 : vector<1x2x96xf32> to vector<2x96xf32>
    %176 = vector.extract_strided_slice %175 {offsets = [0, 0], sizes = [2, 64], strides = [1, 1]} : vector<2x96xf32> to vector<2x64xf32>
    %177 = vector.extract_strided_slice %172 {offsets = [0, 0], sizes = [2, 64], strides = [1, 1]} : vector<2x96xf32> to vector<2x64xf32>
    %178 = arith.addf %176, %177 : vector<2x64xf32>
    %179 = arith.negf %178 : vector<2x64xf32>
    %180 = math.exp %179 : vector<2x64xf32>
    %cst_74 = arith.constant 1.000000e+00 : f32
    %181 = vector.broadcast %cst_74 : f32 to vector<2x64xf32>
    %182 = arith.addf %181, %180 : vector<2x64xf32>
    %183 = arith.divf %181, %182 : vector<2x64xf32>
    %184 = vector.extract_strided_slice %183 {offsets = [0, 0], sizes = [2, 32], strides = [1, 1]} : vector<2x64xf32> to vector<2x32xf32>
    %185 = vector.extract_strided_slice %183 {offsets = [0, 32], sizes = [2, 32], strides = [1, 1]} : vector<2x64xf32> to vector<2x32xf32>
    %186 = vector.extract_strided_slice %175 {offsets = [0, 64], sizes = [2, 32], strides = [1, 1]} : vector<2x96xf32> to vector<2x32xf32>
    %187 = vector.extract_strided_slice %172 {offsets = [0, 64], sizes = [2, 32], strides = [1, 1]} : vector<2x96xf32> to vector<2x32xf32>
    %188 = arith.addf %187, %57 : vector<2x32xf32>
    %189 = arith.mulf %184, %188 : vector<2x32xf32>
    %190 = arith.addf %186, %189 : vector<2x32xf32>
    %191 = math.tanh %190 : vector<2x32xf32>
    %192 = arith.subf %166, %191 : vector<2x32xf32>
    %193 = arith.mulf %185, %192 : vector<2x32xf32>
    %194 = arith.addf %191, %193 : vector<2x32xf32>
    %195 = arith.index_cast %c4_i32 : i32 to index
    %c0_75 = arith.constant 0 : index
    %c0_76 = arith.constant 0 : index
    %196 = vector.load %arg24[%195, %c0_75, %c0_76] : memref<8x2x32xf32, #tpu.memory_space<vmem>>, vector<1x2x32xf32>
    %197 = vector.shape_cast %196 : vector<1x2x32xf32> to vector<2x32xf32>
    %198 = vector.shape_cast %194 : vector<2x32xf32> to vector<1x2x32xf32>
    tpu.vector_store %arg24[%195, %c0_75, %c0_76], %198 {strides = array<i32>} : memref<8x2x32xf32, #tpu.memory_space<vmem>>, vector<1x2x32xf32>,
    %c5_i32 = arith.constant 5 : i32
    %199 = arith.truncf %194 : vector<2x32xf32> to vector<2x32xbf16>
    %cst_77 = arith.constant dense<0.000000e+00> : vector<2x96xf32>
    %200 = tpu.matmul %199, %54, %cst_77 {dimension_numbers = #tpu.dot_dimension_numbers<[1], [0], [0], [1], [0, 0, 1, 1], [], []>} : vector<2x32xbf16>, vector<32x96xbf16>, vector<2x96xf32> -> vector<2x96xf32>
    %201 = arith.index_cast %c5_i32 : i32 to index
    %c0_78 = arith.constant 0 : index
    %c0_79 = arith.constant 0 : index
    %202 = vector.load %arg23[%201, %c0_78, %c0_79] : memref<8x2x96xf32, #tpu.memory_space<vmem>>, vector<1x2x96xf32>
    %203 = vector.shape_cast %202 : vector<1x2x96xf32> to vector<2x96xf32>
    %204 = vector.extract_strided_slice %203 {offsets = [0, 0], sizes = [2, 64], strides = [1, 1]} : vector<2x96xf32> to vector<2x64xf32>
    %205 = vector.extract_strided_slice %200 {offsets = [0, 0], sizes = [2, 64], strides = [1, 1]} : vector<2x96xf32> to vector<2x64xf32>
    %206 = arith.addf %204, %205 : vector<2x64xf32>
    %207 = arith.negf %206 : vector<2x64xf32>
    %208 = math.exp %207 : vector<2x64xf32>
    %cst_80 = arith.constant 1.000000e+00 : f32
    %209 = vector.broadcast %cst_80 : f32 to vector<2x64xf32>
    %210 = arith.addf %209, %208 : vector<2x64xf32>
    %211 = arith.divf %209, %210 : vector<2x64xf32>
    %212 = vector.extract_strided_slice %211 {offsets = [0, 0], sizes = [2, 32], strides = [1, 1]} : vector<2x64xf32> to vector<2x32xf32>
    %213 = vector.extract_strided_slice %211 {offsets = [0, 32], sizes = [2, 32], strides = [1, 1]} : vector<2x64xf32> to vector<2x32xf32>
    %214 = vector.extract_strided_slice %203 {offsets = [0, 64], sizes = [2, 32], strides = [1, 1]} : vector<2x96xf32> to vector<2x32xf32>
    %215 = vector.extract_strided_slice %200 {offsets = [0, 64], sizes = [2, 32], strides = [1, 1]} : vector<2x96xf32> to vector<2x32xf32>
    %216 = arith.addf %215, %57 : vector<2x32xf32>
    %217 = arith.mulf %212, %216 : vector<2x32xf32>
    %218 = arith.addf %214, %217 : vector<2x32xf32>
    %219 = math.tanh %218 : vector<2x32xf32>
    %220 = arith.subf %194, %219 : vector<2x32xf32>
    %221 = arith.mulf %213, %220 : vector<2x32xf32>
    %222 = arith.addf %219, %221 : vector<2x32xf32>
    %223 = arith.index_cast %c5_i32 : i32 to index
    %c0_81 = arith.constant 0 : index
    %c0_82 = arith.constant 0 : index
    %224 = vector.load %arg24[%223, %c0_81, %c0_82] : memref<8x2x32xf32, #tpu.memory_space<vmem>>, vector<1x2x32xf32>
    %225 = vector.shape_cast %224 : vector<1x2x32xf32> to vector<2x32xf32>
    %226 = vector.shape_cast %222 : vector<2x32xf32> to vector<1x2x32xf32>
    tpu.vector_store %arg24[%223, %c0_81, %c0_82], %226 {strides = array<i32>} : memref<8x2x32xf32, #tpu.memory_space<vmem>>, vector<1x2x32xf32>,
    %c6_i32 = arith.constant 6 : i32
    %227 = arith.truncf %222 : vector<2x32xf32> to vector<2x32xbf16>
    %cst_83 = arith.constant dense<0.000000e+00> : vector<2x96xf32>
    %228 = tpu.matmul %227, %54, %cst_83 {dimension_numbers = #tpu.dot_dimension_numbers<[1], [0], [0], [1], [0, 0, 1, 1], [], []>} : vector<2x32xbf16>, vector<32x96xbf16>, vector<2x96xf32> -> vector<2x96xf32>
    %229 = arith.index_cast %c6_i32 : i32 to index
    %c0_84 = arith.constant 0 : index
    %c0_85 = arith.constant 0 : index
    %230 = vector.load %arg23[%229, %c0_84, %c0_85] : memref<8x2x96xf32, #tpu.memory_space<vmem>>, vector<1x2x96xf32>
    %231 = vector.shape_cast %230 : vector<1x2x96xf32> to vector<2x96xf32>
    %232 = vector.extract_strided_slice %231 {offsets = [0, 0], sizes = [2, 64], strides = [1, 1]} : vector<2x96xf32> to vector<2x64xf32>
    %233 = vector.extract_strided_slice %228 {offsets = [0, 0], sizes = [2, 64], strides = [1, 1]} : vector<2x96xf32> to vector<2x64xf32>
    %234 = arith.addf %232, %233 : vector<2x64xf32>
    %235 = arith.negf %234 : vector<2x64xf32>
    %236 = math.exp %235 : vector<2x64xf32>
    %cst_86 = arith.constant 1.000000e+00 : f32
    %237 = vector.broadcast %cst_86 : f32 to vector<2x64xf32>
    %238 = arith.addf %237, %236 : vector<2x64xf32>
    %239 = arith.divf %237, %238 : vector<2x64xf32>
    %240 = vector.extract_strided_slice %239 {offsets = [0, 0], sizes = [2, 32], strides = [1, 1]} : vector<2x64xf32> to vector<2x32xf32>
    %241 = vector.extract_strided_slice %239 {offsets = [0, 32], sizes = [2, 32], strides = [1, 1]} : vector<2x64xf32> to vector<2x32xf32>
    %242 = vector.extract_strided_slice %231 {offsets = [0, 64], sizes = [2, 32], strides = [1, 1]} : vector<2x96xf32> to vector<2x32xf32>
    %243 = vector.extract_strided_slice %228 {offsets = [0, 64], sizes = [2, 32], strides = [1, 1]} : vector<2x96xf32> to vector<2x32xf32>
    %244 = arith.addf %243, %57 : vector<2x32xf32>
    %245 = arith.mulf %240, %244 : vector<2x32xf32>
    %246 = arith.addf %242, %245 : vector<2x32xf32>
    %247 = math.tanh %246 : vector<2x32xf32>
    %248 = arith.subf %222, %247 : vector<2x32xf32>
    %249 = arith.mulf %241, %248 : vector<2x32xf32>
    %250 = arith.addf %247, %249 : vector<2x32xf32>
    %251 = arith.index_cast %c6_i32 : i32 to index
    %c0_87 = arith.constant 0 : index
    %c0_88 = arith.constant 0 : index
    %252 = vector.load %arg24[%251, %c0_87, %c0_88] : memref<8x2x32xf32, #tpu.memory_space<vmem>>, vector<1x2x32xf32>
    %253 = vector.shape_cast %252 : vector<1x2x32xf32> to vector<2x32xf32>
    %254 = vector.shape_cast %250 : vector<2x32xf32> to vector<1x2x32xf32>
    tpu.vector_store %arg24[%251, %c0_87, %c0_88], %254 {strides = array<i32>} : memref<8x2x32xf32, #tpu.memory_space<vmem>>, vector<1x2x32xf32>,
    %c7_i32 = arith.constant 7 : i32
    %255 = arith.truncf %250 : vector<2x32xf32> to vector<2x32xbf16>
    %cst_89 = arith.constant dense<0.000000e+00> : vector<2x96xf32>
    %256 = tpu.matmul %255, %54, %cst_89 {dimension_numbers = #tpu.dot_dimension_numbers<[1], [0], [0], [1], [0, 0, 1, 1], [], []>} : vector<2x32xbf16>, vector<32x96xbf16>, vector<2x96xf32> -> vector<2x96xf32>
    %257 = arith.index_cast %c7_i32 : i32 to index
    %c0_90 = arith.constant 0 : index
    %c0_91 = arith.constant 0 : index
    %258 = vector.load %arg23[%257, %c0_90, %c0_91] : memref<8x2x96xf32, #tpu.memory_space<vmem>>, vector<1x2x96xf32>
    %259 = vector.shape_cast %258 : vector<1x2x96xf32> to vector<2x96xf32>
    %260 = vector.extract_strided_slice %259 {offsets = [0, 0], sizes = [2, 64], strides = [1, 1]} : vector<2x96xf32> to vector<2x64xf32>
    %261 = vector.extract_strided_slice %256 {offsets = [0, 0], sizes = [2, 64], strides = [1, 1]} : vector<2x96xf32> to vector<2x64xf32>
    %262 = arith.addf %260, %261 : vector<2x64xf32>
    %263 = arith.negf %262 : vector<2x64xf32>
    %264 = math.exp %263 : vector<2x64xf32>
    %cst_92 = arith.constant 1.000000e+00 : f32
    %265 = vector.broadcast %cst_92 : f32 to vector<2x64xf32>
    %266 = arith.addf %265, %264 : vector<2x64xf32>
    %267 = arith.divf %265, %266 : vector<2x64xf32>
    %268 = vector.extract_strided_slice %267 {offsets = [0, 0], sizes = [2, 32], strides = [1, 1]} : vector<2x64xf32> to vector<2x32xf32>
    %269 = vector.extract_strided_slice %267 {offsets = [0, 32], sizes = [2, 32], strides = [1, 1]} : vector<2x64xf32> to vector<2x32xf32>
    %270 = vector.extract_strided_slice %259 {offsets = [0, 64], sizes = [2, 32], strides = [1, 1]} : vector<2x96xf32> to vector<2x32xf32>
    %271 = vector.extract_strided_slice %256 {offsets = [0, 64], sizes = [2, 32], strides = [1, 1]} : vector<2x96xf32> to vector<2x32xf32>
    %272 = arith.addf %271, %57 : vector<2x32xf32>
    %273 = arith.mulf %268, %272 : vector<2x32xf32>
    %274 = arith.addf %270, %273 : vector<2x32xf32>
    %275 = math.tanh %274 : vector<2x32xf32>
    %276 = arith.subf %250, %275 : vector<2x32xf32>
    %277 = arith.mulf %269, %276 : vector<2x32xf32>
    %278 = arith.addf %275, %277 : vector<2x32xf32>
    %279 = arith.index_cast %c7_i32 : i32 to index
    %c0_93 = arith.constant 0 : index
    %c0_94 = arith.constant 0 : index
    %280 = vector.load %arg24[%279, %c0_93, %c0_94] : memref<8x2x32xf32, #tpu.memory_space<vmem>>, vector<1x2x32xf32>
    %281 = vector.shape_cast %280 : vector<1x2x32xf32> to vector<2x32xf32>
    %282 = vector.shape_cast %278 : vector<2x32xf32> to vector<1x2x32xf32>
    tpu.vector_store %arg24[%279, %c0_93, %c0_94], %282 {strides = array<i32>} : memref<8x2x32xf32, #tpu.memory_space<vmem>>, vector<1x2x32xf32>,
    %c8_i32 = arith.constant 8 : i32
    %c0_95 = arith.constant 0 : index
    %c0_96 = arith.constant 0 : index
    %c0_97 = arith.constant 0 : index
    %283 = vector.load %arg24[%c0_95, %c0_96, %c0_97] : memref<8x2x32xf32, #tpu.memory_space<vmem>>, vector<8x2x32xf32>
    %284 = vector.shape_cast %283 : vector<8x2x32xf32> to vector<16x32xf32>
    %285 = arith.truncf %284 : vector<16x32xf32> to vector<16x32xbf16>
    %c0_98 = arith.constant 0 : index
    %c0_99 = arith.constant 0 : index
    %286 = vector.load %arg16[%c0_98, %c0_99] : memref<32x96xbf16, #tpu.memory_space<vmem>>, vector<32x96xbf16>
    %cst_100 = arith.constant dense<0.000000e+00> : vector<16x96xf32>
    %287 = tpu.matmul %285, %286, %cst_100 {dimension_numbers = #tpu.dot_dimension_numbers<[1], [0], [0], [1], [0, 0, 1, 1], [], []>} : vector<16x32xbf16>, vector<32x96xbf16>, vector<16x96xf32> -> vector<16x96xf32>
    %c0_101 = arith.constant 0 : index
    %c0_102 = arith.constant 0 : index
    %288 = vector.load %arg18[%c0_101, %c0_102] : memref<1x96xf32, #tpu.memory_space<vmem>>, vector<1x96xf32>
    %289 = vector.broadcast %288 : vector<1x96xf32> to vector<16x96xf32>
    %290 = arith.addf %287, %289 : vector<16x96xf32>
    %291 = vector.shape_cast %290 : vector<16x96xf32> to vector<8x2x96xf32>
    %c0_103 = arith.constant 0 : index
    %c0_104 = arith.constant 0 : index
    %c0_105 = arith.constant 0 : index
    %292 = vector.load %arg23[%c0_103, %c0_104, %c0_105] : memref<8x2x96xf32, #tpu.memory_space<vmem>>, vector<8x2x96xf32>
    tpu.vector_store %arg23[%c0_103, %c0_104, %c0_105], %291 {strides = array<i32>} : memref<8x2x96xf32, #tpu.memory_space<vmem>>, vector<8x2x96xf32>,
    %c0_106 = arith.constant 0 : index
    %c0_107 = arith.constant 0 : index
    %293 = vector.load %arg17[%c0_106, %c0_107] : memref<32x96xbf16, #tpu.memory_space<vmem>>, vector<32x96xbf16>
    %c0_108 = arith.constant 0 : index
    %c0_109 = arith.constant 0 : index
    %294 = vector.load %arg19[%c0_108, %c0_109] : memref<1x32xf32, #tpu.memory_space<vmem>>, vector<1x32xf32>
    %295 = vector.shape_cast %294 : vector<1x32xf32> to vector<1x32xf32>
    %296 = vector.broadcast %295 : vector<1x32xf32> to vector<2x32xf32>
    %cst_110 = arith.constant 0.000000e+00 : f32
    %297 = vector.broadcast %cst_110 : f32 to vector<2x32xf32>
    %c0_i32_111 = arith.constant 0 : i32
    %298 = arith.truncf %297 : vector<2x32xf32> to vector<2x32xbf16>
    %cst_112 = arith.constant dense<0.000000e+00> : vector<2x96xf32>
    %299 = tpu.matmul %298, %293, %cst_112 {dimension_numbers = #tpu.dot_dimension_numbers<[1], [0], [0], [1], [0, 0, 1, 1], [], []>} : vector<2x32xbf16>, vector<32x96xbf16>, vector<2x96xf32> -> vector<2x96xf32>
    %300 = arith.index_cast %c0_i32_111 : i32 to index
    %c0_113 = arith.constant 0 : index
    %c0_114 = arith.constant 0 : index
    %301 = vector.load %arg23[%300, %c0_113, %c0_114] : memref<8x2x96xf32, #tpu.memory_space<vmem>>, vector<1x2x96xf32>
    %302 = vector.shape_cast %301 : vector<1x2x96xf32> to vector<2x96xf32>
    %303 = vector.extract_strided_slice %302 {offsets = [0, 0], sizes = [2, 64], strides = [1, 1]} : vector<2x96xf32> to vector<2x64xf32>
    %304 = vector.extract_strided_slice %299 {offsets = [0, 0], sizes = [2, 64], strides = [1, 1]} : vector<2x96xf32> to vector<2x64xf32>
    %305 = arith.addf %303, %304 : vector<2x64xf32>
    %306 = arith.negf %305 : vector<2x64xf32>
    %307 = math.exp %306 : vector<2x64xf32>
    %cst_115 = arith.constant 1.000000e+00 : f32
    %308 = vector.broadcast %cst_115 : f32 to vector<2x64xf32>
    %309 = arith.addf %308, %307 : vector<2x64xf32>
    %310 = arith.divf %308, %309 : vector<2x64xf32>
    %311 = vector.extract_strided_slice %310 {offsets = [0, 0], sizes = [2, 32], strides = [1, 1]} : vector<2x64xf32> to vector<2x32xf32>
    %312 = vector.extract_strided_slice %310 {offsets = [0, 32], sizes = [2, 32], strides = [1, 1]} : vector<2x64xf32> to vector<2x32xf32>
    %313 = vector.extract_strided_slice %302 {offsets = [0, 64], sizes = [2, 32], strides = [1, 1]} : vector<2x96xf32> to vector<2x32xf32>
    %314 = vector.extract_strided_slice %299 {offsets = [0, 64], sizes = [2, 32], strides = [1, 1]} : vector<2x96xf32> to vector<2x32xf32>
    %315 = arith.addf %314, %296 : vector<2x32xf32>
    %316 = arith.mulf %311, %315 : vector<2x32xf32>
    %317 = arith.addf %313, %316 : vector<2x32xf32>
    %318 = math.tanh %317 : vector<2x32xf32>
    %319 = arith.subf %297, %318 : vector<2x32xf32>
    %320 = arith.mulf %312, %319 : vector<2x32xf32>
    %321 = arith.addf %318, %320 : vector<2x32xf32>
    %322 = arith.index_cast %c0_i32_111 : i32 to index
    %c0_116 = arith.constant 0 : index
    %c0_117 = arith.constant 0 : index
    %323 = vector.load %arg24[%322, %c0_116, %c0_117] : memref<8x2x32xf32, #tpu.memory_space<vmem>>, vector<1x2x32xf32>
    %324 = vector.shape_cast %323 : vector<1x2x32xf32> to vector<2x32xf32>
    %325 = vector.shape_cast %321 : vector<2x32xf32> to vector<1x2x32xf32>
    tpu.vector_store %arg24[%322, %c0_116, %c0_117], %325 {strides = array<i32>} : memref<8x2x32xf32, #tpu.memory_space<vmem>>, vector<1x2x32xf32>,
    %c1_i32_118 = arith.constant 1 : i32
    %326 = arith.truncf %321 : vector<2x32xf32> to vector<2x32xbf16>
    %cst_119 = arith.constant dense<0.000000e+00> : vector<2x96xf32>
    %327 = tpu.matmul %326, %293, %cst_119 {dimension_numbers = #tpu.dot_dimension_numbers<[1], [0], [0], [1], [0, 0, 1, 1], [], []>} : vector<2x32xbf16>, vector<32x96xbf16>, vector<2x96xf32> -> vector<2x96xf32>
    %328 = arith.index_cast %c1_i32_118 : i32 to index
    %c0_120 = arith.constant 0 : index
    %c0_121 = arith.constant 0 : index
    %329 = vector.load %arg23[%328, %c0_120, %c0_121] : memref<8x2x96xf32, #tpu.memory_space<vmem>>, vector<1x2x96xf32>
    %330 = vector.shape_cast %329 : vector<1x2x96xf32> to vector<2x96xf32>
    %331 = vector.extract_strided_slice %330 {offsets = [0, 0], sizes = [2, 64], strides = [1, 1]} : vector<2x96xf32> to vector<2x64xf32>
    %332 = vector.extract_strided_slice %327 {offsets = [0, 0], sizes = [2, 64], strides = [1, 1]} : vector<2x96xf32> to vector<2x64xf32>
    %333 = arith.addf %331, %332 : vector<2x64xf32>
    %334 = arith.negf %333 : vector<2x64xf32>
    %335 = math.exp %334 : vector<2x64xf32>
    %cst_122 = arith.constant 1.000000e+00 : f32
    %336 = vector.broadcast %cst_122 : f32 to vector<2x64xf32>
    %337 = arith.addf %336, %335 : vector<2x64xf32>
    %338 = arith.divf %336, %337 : vector<2x64xf32>
    %339 = vector.extract_strided_slice %338 {offsets = [0, 0], sizes = [2, 32], strides = [1, 1]} : vector<2x64xf32> to vector<2x32xf32>
    %340 = vector.extract_strided_slice %338 {offsets = [0, 32], sizes = [2, 32], strides = [1, 1]} : vector<2x64xf32> to vector<2x32xf32>
    %341 = vector.extract_strided_slice %330 {offsets = [0, 64], sizes = [2, 32], strides = [1, 1]} : vector<2x96xf32> to vector<2x32xf32>
    %342 = vector.extract_strided_slice %327 {offsets = [0, 64], sizes = [2, 32], strides = [1, 1]} : vector<2x96xf32> to vector<2x32xf32>
    %343 = arith.addf %342, %296 : vector<2x32xf32>
    %344 = arith.mulf %339, %343 : vector<2x32xf32>
    %345 = arith.addf %341, %344 : vector<2x32xf32>
    %346 = math.tanh %345 : vector<2x32xf32>
    %347 = arith.subf %321, %346 : vector<2x32xf32>
    %348 = arith.mulf %340, %347 : vector<2x32xf32>
    %349 = arith.addf %346, %348 : vector<2x32xf32>
    %350 = arith.index_cast %c1_i32_118 : i32 to index
    %c0_123 = arith.constant 0 : index
    %c0_124 = arith.constant 0 : index
    %351 = vector.load %arg24[%350, %c0_123, %c0_124] : memref<8x2x32xf32, #tpu.memory_space<vmem>>, vector<1x2x32xf32>
    %352 = vector.shape_cast %351 : vector<1x2x32xf32> to vector<2x32xf32>
    %353 = vector.shape_cast %349 : vector<2x32xf32> to vector<1x2x32xf32>
    tpu.vector_store %arg24[%350, %c0_123, %c0_124], %353 {strides = array<i32>} : memref<8x2x32xf32, #tpu.memory_space<vmem>>, vector<1x2x32xf32>,
    %c2_i32_125 = arith.constant 2 : i32
    %354 = arith.truncf %349 : vector<2x32xf32> to vector<2x32xbf16>
    %cst_126 = arith.constant dense<0.000000e+00> : vector<2x96xf32>
    %355 = tpu.matmul %354, %293, %cst_126 {dimension_numbers = #tpu.dot_dimension_numbers<[1], [0], [0], [1], [0, 0, 1, 1], [], []>} : vector<2x32xbf16>, vector<32x96xbf16>, vector<2x96xf32> -> vector<2x96xf32>
    %356 = arith.index_cast %c2_i32_125 : i32 to index
    %c0_127 = arith.constant 0 : index
    %c0_128 = arith.constant 0 : index
    %357 = vector.load %arg23[%356, %c0_127, %c0_128] : memref<8x2x96xf32, #tpu.memory_space<vmem>>, vector<1x2x96xf32>
    %358 = vector.shape_cast %357 : vector<1x2x96xf32> to vector<2x96xf32>
    %359 = vector.extract_strided_slice %358 {offsets = [0, 0], sizes = [2, 64], strides = [1, 1]} : vector<2x96xf32> to vector<2x64xf32>
    %360 = vector.extract_strided_slice %355 {offsets = [0, 0], sizes = [2, 64], strides = [1, 1]} : vector<2x96xf32> to vector<2x64xf32>
    %361 = arith.addf %359, %360 : vector<2x64xf32>
    %362 = arith.negf %361 : vector<2x64xf32>
    %363 = math.exp %362 : vector<2x64xf32>
    %cst_129 = arith.constant 1.000000e+00 : f32
    %364 = vector.broadcast %cst_129 : f32 to vector<2x64xf32>
    %365 = arith.addf %364, %363 : vector<2x64xf32>
    %366 = arith.divf %364, %365 : vector<2x64xf32>
    %367 = vector.extract_strided_slice %366 {offsets = [0, 0], sizes = [2, 32], strides = [1, 1]} : vector<2x64xf32> to vector<2x32xf32>
    %368 = vector.extract_strided_slice %366 {offsets = [0, 32], sizes = [2, 32], strides = [1, 1]} : vector<2x64xf32> to vector<2x32xf32>
    %369 = vector.extract_strided_slice %358 {offsets = [0, 64], sizes = [2, 32], strides = [1, 1]} : vector<2x96xf32> to vector<2x32xf32>
    %370 = vector.extract_strided_slice %355 {offsets = [0, 64], sizes = [2, 32], strides = [1, 1]} : vector<2x96xf32> to vector<2x32xf32>
    %371 = arith.addf %370, %296 : vector<2x32xf32>
    %372 = arith.mulf %367, %371 : vector<2x32xf32>
    %373 = arith.addf %369, %372 : vector<2x32xf32>
    %374 = math.tanh %373 : vector<2x32xf32>
    %375 = arith.subf %349, %374 : vector<2x32xf32>
    %376 = arith.mulf %368, %375 : vector<2x32xf32>
    %377 = arith.addf %374, %376 : vector<2x32xf32>
    %378 = arith.index_cast %c2_i32_125 : i32 to index
    %c0_130 = arith.constant 0 : index
    %c0_131 = arith.constant 0 : index
    %379 = vector.load %arg24[%378, %c0_130, %c0_131] : memref<8x2x32xf32, #tpu.memory_space<vmem>>, vector<1x2x32xf32>
    %380 = vector.shape_cast %379 : vector<1x2x32xf32> to vector<2x32xf32>
    %381 = vector.shape_cast %377 : vector<2x32xf32> to vector<1x2x32xf32>
    tpu.vector_store %arg24[%378, %c0_130, %c0_131], %381 {strides = array<i32>} : memref<8x2x32xf32, #tpu.memory_space<vmem>>, vector<1x2x32xf32>,
    %c3_i32_132 = arith.constant 3 : i32
    %382 = arith.truncf %377 : vector<2x32xf32> to vector<2x32xbf16>
    %cst_133 = arith.constant dense<0.000000e+00> : vector<2x96xf32>
    %383 = tpu.matmul %382, %293, %cst_133 {dimension_numbers = #tpu.dot_dimension_numbers<[1], [0], [0], [1], [0, 0, 1, 1], [], []>} : vector<2x32xbf16>, vector<32x96xbf16>, vector<2x96xf32> -> vector<2x96xf32>
    %384 = arith.index_cast %c3_i32_132 : i32 to index
    %c0_134 = arith.constant 0 : index
    %c0_135 = arith.constant 0 : index
    %385 = vector.load %arg23[%384, %c0_134, %c0_135] : memref<8x2x96xf32, #tpu.memory_space<vmem>>, vector<1x2x96xf32>
    %386 = vector.shape_cast %385 : vector<1x2x96xf32> to vector<2x96xf32>
    %387 = vector.extract_strided_slice %386 {offsets = [0, 0], sizes = [2, 64], strides = [1, 1]} : vector<2x96xf32> to vector<2x64xf32>
    %388 = vector.extract_strided_slice %383 {offsets = [0, 0], sizes = [2, 64], strides = [1, 1]} : vector<2x96xf32> to vector<2x64xf32>
    %389 = arith.addf %387, %388 : vector<2x64xf32>
    %390 = arith.negf %389 : vector<2x64xf32>
    %391 = math.exp %390 : vector<2x64xf32>
    %cst_136 = arith.constant 1.000000e+00 : f32
    %392 = vector.broadcast %cst_136 : f32 to vector<2x64xf32>
    %393 = arith.addf %392, %391 : vector<2x64xf32>
    %394 = arith.divf %392, %393 : vector<2x64xf32>
    %395 = vector.extract_strided_slice %394 {offsets = [0, 0], sizes = [2, 32], strides = [1, 1]} : vector<2x64xf32> to vector<2x32xf32>
    %396 = vector.extract_strided_slice %394 {offsets = [0, 32], sizes = [2, 32], strides = [1, 1]} : vector<2x64xf32> to vector<2x32xf32>
    %397 = vector.extract_strided_slice %386 {offsets = [0, 64], sizes = [2, 32], strides = [1, 1]} : vector<2x96xf32> to vector<2x32xf32>
    %398 = vector.extract_strided_slice %383 {offsets = [0, 64], sizes = [2, 32], strides = [1, 1]} : vector<2x96xf32> to vector<2x32xf32>
    %399 = arith.addf %398, %296 : vector<2x32xf32>
    %400 = arith.mulf %395, %399 : vector<2x32xf32>
    %401 = arith.addf %397, %400 : vector<2x32xf32>
    %402 = math.tanh %401 : vector<2x32xf32>
    %403 = arith.subf %377, %402 : vector<2x32xf32>
    %404 = arith.mulf %396, %403 : vector<2x32xf32>
    %405 = arith.addf %402, %404 : vector<2x32xf32>
    %406 = arith.index_cast %c3_i32_132 : i32 to index
    %c0_137 = arith.constant 0 : index
    %c0_138 = arith.constant 0 : index
    %407 = vector.load %arg24[%406, %c0_137, %c0_138] : memref<8x2x32xf32, #tpu.memory_space<vmem>>, vector<1x2x32xf32>
    %408 = vector.shape_cast %407 : vector<1x2x32xf32> to vector<2x32xf32>
    %409 = vector.shape_cast %405 : vector<2x32xf32> to vector<1x2x32xf32>
    tpu.vector_store %arg24[%406, %c0_137, %c0_138], %409 {strides = array<i32>} : memref<8x2x32xf32, #tpu.memory_space<vmem>>, vector<1x2x32xf32>,
    %c4_i32_139 = arith.constant 4 : i32
    %410 = arith.truncf %405 : vector<2x32xf32> to vector<2x32xbf16>
    %cst_140 = arith.constant dense<0.000000e+00> : vector<2x96xf32>
    %411 = tpu.matmul %410, %293, %cst_140 {dimension_numbers = #tpu.dot_dimension_numbers<[1], [0], [0], [1], [0, 0, 1, 1], [], []>} : vector<2x32xbf16>, vector<32x96xbf16>, vector<2x96xf32> -> vector<2x96xf32>
    %412 = arith.index_cast %c4_i32_139 : i32 to index
    %c0_141 = arith.constant 0 : index
    %c0_142 = arith.constant 0 : index
    %413 = vector.load %arg23[%412, %c0_141, %c0_142] : memref<8x2x96xf32, #tpu.memory_space<vmem>>, vector<1x2x96xf32>
    %414 = vector.shape_cast %413 : vector<1x2x96xf32> to vector<2x96xf32>
    %415 = vector.extract_strided_slice %414 {offsets = [0, 0], sizes = [2, 64], strides = [1, 1]} : vector<2x96xf32> to vector<2x64xf32>
    %416 = vector.extract_strided_slice %411 {offsets = [0, 0], sizes = [2, 64], strides = [1, 1]} : vector<2x96xf32> to vector<2x64xf32>
    %417 = arith.addf %415, %416 : vector<2x64xf32>
    %418 = arith.negf %417 : vector<2x64xf32>
    %419 = math.exp %418 : vector<2x64xf32>
    %cst_143 = arith.constant 1.000000e+00 : f32
    %420 = vector.broadcast %cst_143 : f32 to vector<2x64xf32>
    %421 = arith.addf %420, %419 : vector<2x64xf32>
    %422 = arith.divf %420, %421 : vector<2x64xf32>
    %423 = vector.extract_strided_slice %422 {offsets = [0, 0], sizes = [2, 32], strides = [1, 1]} : vector<2x64xf32> to vector<2x32xf32>
    %424 = vector.extract_strided_slice %422 {offsets = [0, 32], sizes = [2, 32], strides = [1, 1]} : vector<2x64xf32> to vector<2x32xf32>
    %425 = vector.extract_strided_slice %414 {offsets = [0, 64], sizes = [2, 32], strides = [1, 1]} : vector<2x96xf32> to vector<2x32xf32>
    %426 = vector.extract_strided_slice %411 {offsets = [0, 64], sizes = [2, 32], strides = [1, 1]} : vector<2x96xf32> to vector<2x32xf32>
    %427 = arith.addf %426, %296 : vector<2x32xf32>
    %428 = arith.mulf %423, %427 : vector<2x32xf32>
    %429 = arith.addf %425, %428 : vector<2x32xf32>
    %430 = math.tanh %429 : vector<2x32xf32>
    %431 = arith.subf %405, %430 : vector<2x32xf32>
    %432 = arith.mulf %424, %431 : vector<2x32xf32>
    %433 = arith.addf %430, %432 : vector<2x32xf32>
    %434 = arith.index_cast %c4_i32_139 : i32 to index
    %c0_144 = arith.constant 0 : index
    %c0_145 = arith.constant 0 : index
    %435 = vector.load %arg24[%434, %c0_144, %c0_145] : memref<8x2x32xf32, #tpu.memory_space<vmem>>, vector<1x2x32xf32>
    %436 = vector.shape_cast %435 : vector<1x2x32xf32> to vector<2x32xf32>
    %437 = vector.shape_cast %433 : vector<2x32xf32> to vector<1x2x32xf32>
    tpu.vector_store %arg24[%434, %c0_144, %c0_145], %437 {strides = array<i32>} : memref<8x2x32xf32, #tpu.memory_space<vmem>>, vector<1x2x32xf32>,
    %c5_i32_146 = arith.constant 5 : i32
    %438 = arith.truncf %433 : vector<2x32xf32> to vector<2x32xbf16>
    %cst_147 = arith.constant dense<0.000000e+00> : vector<2x96xf32>
    %439 = tpu.matmul %438, %293, %cst_147 {dimension_numbers = #tpu.dot_dimension_numbers<[1], [0], [0], [1], [0, 0, 1, 1], [], []>} : vector<2x32xbf16>, vector<32x96xbf16>, vector<2x96xf32> -> vector<2x96xf32>
    %440 = arith.index_cast %c5_i32_146 : i32 to index
    %c0_148 = arith.constant 0 : index
    %c0_149 = arith.constant 0 : index
    %441 = vector.load %arg23[%440, %c0_148, %c0_149] : memref<8x2x96xf32, #tpu.memory_space<vmem>>, vector<1x2x96xf32>
    %442 = vector.shape_cast %441 : vector<1x2x96xf32> to vector<2x96xf32>
    %443 = vector.extract_strided_slice %442 {offsets = [0, 0], sizes = [2, 64], strides = [1, 1]} : vector<2x96xf32> to vector<2x64xf32>
    %444 = vector.extract_strided_slice %439 {offsets = [0, 0], sizes = [2, 64], strides = [1, 1]} : vector<2x96xf32> to vector<2x64xf32>
    %445 = arith.addf %443, %444 : vector<2x64xf32>
    %446 = arith.negf %445 : vector<2x64xf32>
    %447 = math.exp %446 : vector<2x64xf32>
    %cst_150 = arith.constant 1.000000e+00 : f32
    %448 = vector.broadcast %cst_150 : f32 to vector<2x64xf32>
    %449 = arith.addf %448, %447 : vector<2x64xf32>
    %450 = arith.divf %448, %449 : vector<2x64xf32>
    %451 = vector.extract_strided_slice %450 {offsets = [0, 0], sizes = [2, 32], strides = [1, 1]} : vector<2x64xf32> to vector<2x32xf32>
    %452 = vector.extract_strided_slice %450 {offsets = [0, 32], sizes = [2, 32], strides = [1, 1]} : vector<2x64xf32> to vector<2x32xf32>
    %453 = vector.extract_strided_slice %442 {offsets = [0, 64], sizes = [2, 32], strides = [1, 1]} : vector<2x96xf32> to vector<2x32xf32>
    %454 = vector.extract_strided_slice %439 {offsets = [0, 64], sizes = [2, 32], strides = [1, 1]} : vector<2x96xf32> to vector<2x32xf32>
    %455 = arith.addf %454, %296 : vector<2x32xf32>
    %456 = arith.mulf %451, %455 : vector<2x32xf32>
    %457 = arith.addf %453, %456 : vector<2x32xf32>
    %458 = math.tanh %457 : vector<2x32xf32>
    %459 = arith.subf %433, %458 : vector<2x32xf32>
    %460 = arith.mulf %452, %459 : vector<2x32xf32>
    %461 = arith.addf %458, %460 : vector<2x32xf32>
    %462 = arith.index_cast %c5_i32_146 : i32 to index
    %c0_151 = arith.constant 0 : index
    %c0_152 = arith.constant 0 : index
    %463 = vector.load %arg24[%462, %c0_151, %c0_152] : memref<8x2x32xf32, #tpu.memory_space<vmem>>, vector<1x2x32xf32>
    %464 = vector.shape_cast %463 : vector<1x2x32xf32> to vector<2x32xf32>
    %465 = vector.shape_cast %461 : vector<2x32xf32> to vector<1x2x32xf32>
    tpu.vector_store %arg24[%462, %c0_151, %c0_152], %465 {strides = array<i32>} : memref<8x2x32xf32, #tpu.memory_space<vmem>>, vector<1x2x32xf32>,
    %c6_i32_153 = arith.constant 6 : i32
    %466 = arith.truncf %461 : vector<2x32xf32> to vector<2x32xbf16>
    %cst_154 = arith.constant dense<0.000000e+00> : vector<2x96xf32>
    %467 = tpu.matmul %466, %293, %cst_154 {dimension_numbers = #tpu.dot_dimension_numbers<[1], [0], [0], [1], [0, 0, 1, 1], [], []>} : vector<2x32xbf16>, vector<32x96xbf16>, vector<2x96xf32> -> vector<2x96xf32>
    %468 = arith.index_cast %c6_i32_153 : i32 to index
    %c0_155 = arith.constant 0 : index
    %c0_156 = arith.constant 0 : index
    %469 = vector.load %arg23[%468, %c0_155, %c0_156] : memref<8x2x96xf32, #tpu.memory_space<vmem>>, vector<1x2x96xf32>
    %470 = vector.shape_cast %469 : vector<1x2x96xf32> to vector<2x96xf32>
    %471 = vector.extract_strided_slice %470 {offsets = [0, 0], sizes = [2, 64], strides = [1, 1]} : vector<2x96xf32> to vector<2x64xf32>
    %472 = vector.extract_strided_slice %467 {offsets = [0, 0], sizes = [2, 64], strides = [1, 1]} : vector<2x96xf32> to vector<2x64xf32>
    %473 = arith.addf %471, %472 : vector<2x64xf32>
    %474 = arith.negf %473 : vector<2x64xf32>
    %475 = math.exp %474 : vector<2x64xf32>
    %cst_157 = arith.constant 1.000000e+00 : f32
    %476 = vector.broadcast %cst_157 : f32 to vector<2x64xf32>
    %477 = arith.addf %476, %475 : vector<2x64xf32>
    %478 = arith.divf %476, %477 : vector<2x64xf32>
    %479 = vector.extract_strided_slice %478 {offsets = [0, 0], sizes = [2, 32], strides = [1, 1]} : vector<2x64xf32> to vector<2x32xf32>
    %480 = vector.extract_strided_slice %478 {offsets = [0, 32], sizes = [2, 32], strides = [1, 1]} : vector<2x64xf32> to vector<2x32xf32>
    %481 = vector.extract_strided_slice %470 {offsets = [0, 64], sizes = [2, 32], strides = [1, 1]} : vector<2x96xf32> to vector<2x32xf32>
    %482 = vector.extract_strided_slice %467 {offsets = [0, 64], sizes = [2, 32], strides = [1, 1]} : vector<2x96xf32> to vector<2x32xf32>
    %483 = arith.addf %482, %296 : vector<2x32xf32>
    %484 = arith.mulf %479, %483 : vector<2x32xf32>
    %485 = arith.addf %481, %484 : vector<2x32xf32>
    %486 = math.tanh %485 : vector<2x32xf32>
    %487 = arith.subf %461, %486 : vector<2x32xf32>
    %488 = arith.mulf %480, %487 : vector<2x32xf32>
    %489 = arith.addf %486, %488 : vector<2x32xf32>
    %490 = arith.index_cast %c6_i32_153 : i32 to index
    %c0_158 = arith.constant 0 : index
    %c0_159 = arith.constant 0 : index
    %491 = vector.load %arg24[%490, %c0_158, %c0_159] : memref<8x2x32xf32, #tpu.memory_space<vmem>>, vector<1x2x32xf32>
    %492 = vector.shape_cast %491 : vector<1x2x32xf32> to vector<2x32xf32>
    %493 = vector.shape_cast %489 : vector<2x32xf32> to vector<1x2x32xf32>
    tpu.vector_store %arg24[%490, %c0_158, %c0_159], %493 {strides = array<i32>} : memref<8x2x32xf32, #tpu.memory_space<vmem>>, vector<1x2x32xf32>,
    %c7_i32_160 = arith.constant 7 : i32
    %494 = arith.truncf %489 : vector<2x32xf32> to vector<2x32xbf16>
    %cst_161 = arith.constant dense<0.000000e+00> : vector<2x96xf32>
    %495 = tpu.matmul %494, %293, %cst_161 {dimension_numbers = #tpu.dot_dimension_numbers<[1], [0], [0], [1], [0, 0, 1, 1], [], []>} : vector<2x32xbf16>, vector<32x96xbf16>, vector<2x96xf32> -> vector<2x96xf32>
    %496 = arith.index_cast %c7_i32_160 : i32 to index
    %c0_162 = arith.constant 0 : index
    %c0_163 = arith.constant 0 : index
    %497 = vector.load %arg23[%496, %c0_162, %c0_163] : memref<8x2x96xf32, #tpu.memory_space<vmem>>, vector<1x2x96xf32>
    %498 = vector.shape_cast %497 : vector<1x2x96xf32> to vector<2x96xf32>
    %499 = vector.extract_strided_slice %498 {offsets = [0, 0], sizes = [2, 64], strides = [1, 1]} : vector<2x96xf32> to vector<2x64xf32>
    %500 = vector.extract_strided_slice %495 {offsets = [0, 0], sizes = [2, 64], strides = [1, 1]} : vector<2x96xf32> to vector<2x64xf32>
    %501 = arith.addf %499, %500 : vector<2x64xf32>
    %502 = arith.negf %501 : vector<2x64xf32>
    %503 = math.exp %502 : vector<2x64xf32>
    %cst_164 = arith.constant 1.000000e+00 : f32
    %504 = vector.broadcast %cst_164 : f32 to vector<2x64xf32>
    %505 = arith.addf %504, %503 : vector<2x64xf32>
    %506 = arith.divf %504, %505 : vector<2x64xf32>
    %507 = vector.extract_strided_slice %506 {offsets = [0, 0], sizes = [2, 32], strides = [1, 1]} : vector<2x64xf32> to vector<2x32xf32>
    %508 = vector.extract_strided_slice %506 {offsets = [0, 32], sizes = [2, 32], strides = [1, 1]} : vector<2x64xf32> to vector<2x32xf32>
    %509 = vector.extract_strided_slice %498 {offsets = [0, 64], sizes = [2, 32], strides = [1, 1]} : vector<2x96xf32> to vector<2x32xf32>
    %510 = vector.extract_strided_slice %495 {offsets = [0, 64], sizes = [2, 32], strides = [1, 1]} : vector<2x96xf32> to vector<2x32xf32>
    %511 = arith.addf %510, %296 : vector<2x32xf32>
    %512 = arith.mulf %507, %511 : vector<2x32xf32>
    %513 = arith.addf %509, %512 : vector<2x32xf32>
    %514 = math.tanh %513 : vector<2x32xf32>
    %515 = arith.subf %489, %514 : vector<2x32xf32>
    %516 = arith.mulf %508, %515 : vector<2x32xf32>
    %517 = arith.addf %514, %516 : vector<2x32xf32>
    %518 = arith.index_cast %c7_i32_160 : i32 to index
    %c0_165 = arith.constant 0 : index
    %c0_166 = arith.constant 0 : index
    %519 = vector.load %arg24[%518, %c0_165, %c0_166] : memref<8x2x32xf32, #tpu.memory_space<vmem>>, vector<1x2x32xf32>
    %520 = vector.shape_cast %519 : vector<1x2x32xf32> to vector<2x32xf32>
    %521 = vector.shape_cast %517 : vector<2x32xf32> to vector<1x2x32xf32>
    tpu.vector_store %arg24[%518, %c0_165, %c0_166], %521 {strides = array<i32>} : memref<8x2x32xf32, #tpu.memory_space<vmem>>, vector<1x2x32xf32>,
    %c8_i32_167 = arith.constant 8 : i32
    %c0_168 = arith.constant 0 : index
    %c0_169 = arith.constant 0 : index
    %c0_170 = arith.constant 0 : index
    %522 = vector.load %arg24[%c0_168, %c0_169, %c0_170] : memref<8x2x32xf32, #tpu.memory_space<vmem>>, vector<8x2x32xf32>
    %523 = vector.shape_cast %522 : vector<8x2x32xf32> to vector<16x32xf32>
    %c0_171 = arith.constant 0 : index
    %c0_172 = arith.constant 0 : index
    %524 = vector.load %arg20[%c0_171, %c0_172] : memref<32x128xf32, #tpu.memory_space<vmem>>, vector<32x128xf32>
    %cst_173 = arith.constant dense<0.000000e+00> : vector<16x128xf32>
    %525 = tpu.matmul %523, %524, %cst_173 {dimension_numbers = #tpu.dot_dimension_numbers<[1], [0], [0], [1], [0, 0, 1, 1], [], []>} : vector<16x32xf32>, vector<32x128xf32>, vector<16x128xf32> -> vector<16x128xf32>
    %c0_174 = arith.constant 0 : index
    %c0_175 = arith.constant 0 : index
    %526 = vector.load %arg21[%c0_174, %c0_175] : memref<1x128xf32, #tpu.memory_space<vmem>>, vector<1x128xf32>
    %527 = vector.broadcast %526 : vector<1x128xf32> to vector<16x128xf32>
    %528 = arith.addf %525, %527 : vector<16x128xf32>
    %c0_176 = arith.constant 0 : index
    %c0_177 = arith.constant 0 : index
    %529 = vector.load %arg22[%c0_176, %c0_177] : memref<16x128xf32, #tpu.memory_space<vmem>>, vector<16x128xf32>
    tpu.vector_store %arg22[%c0_176, %c0_177], %528 {strides = array<i32>} : memref<16x128xf32, #tpu.memory_space<vmem>>, vector<16x128xf32>,
    return
  }
}

</mosaic_0001>

<bundles_post_ra>
// kernel: transition_graph_forward.1
= control target key start
LH: loop header
LB: loop body
LE: loop exit
PB: predicated region body
PF: predicated region fallthrough
CT: control target
= control target key end

     0   :  { %s3883_s0 = inlined_call_operand.vmem [shape: bf16[16,32], index: 0, kind: input, shape index: {}]   ;;  %s3884_s1 = inlined_call_operand.hbm [shape: bf16[16,16], index: 1, kind: input, shape index: {}]   ;;  %s3885_s2 = inlined_call_operand.hbm [shape: bf16[16,16], index: 2, kind: input, shape index: {}]   ;;  %s3886_s3 = inlined_call_operand.vmem [shape: bf16[32,64], index: 3, kind: input, shape index: {}]   ;;  %s3887_s4 = inlined_call_operand.vmem [shape: f32[1,32], index: 4, kind: input, shape index: {}]   ;;  %s3888_s5 = inlined_call_operand.hbm [shape: f32[1,32], index: 5, kind: input, shape index: {}]   ;;  %s3889_s6 = inlined_call_operand.vmem [shape: bf16[32,16], index: 6, kind: input, shape index: {}]   ;;  %s3890_s7 = inlined_call_operand.hbm [shape: f32[1,16], index: 7, kind: input, shape index: {}]   ;;  %s3891_s8 = inlined_call_operand.vmem [shape: bf16[32,16], index: 8, kind: input, shape index: {}]   ;;  %s3892_s9 = inlined_call_operand.hbm [shape: f32[1,16], index: 9, kind: input, shape index: {}]   ;;  %s3893_s10 = inlined_call_operand.vmem [shape: bf16[16,16], index: 10, kind: input, shape index: {}]   ;;  %s3894_s11 = inlined_call_operand.vmem [shape: bf16[16,96], index: 11, kind: input, shape index: {}]   ;;  %s3895_s12 = inlined_call_operand.vmem [shape: bf16[16,96], index: 12, kind: input, shape index: {}]   ;;  %s3896_s13 = inlined_call_operand.vmem [shape: bf16[32,96], index: 13, kind: input, shape index: {}]   ;;  %s3897_s14 = inlined_call_operand.vmem [shape: f32[1,96], index: 14, kind: input, shape index: {}]   ;;  %s3898_s15 = inlined_call_operand.vmem [shape: f32[1,32], index: 15, kind: input, shape index: {}]   ;;  %s3899_s16 = inlined_call_operand.vmem [shape: bf16[32,96], index: 16, kind: input, shape index: {}]   ;;  %s3900_s17 = inlined_call_operand.vmem [shape: bf16[32,96], index: 17, kind: input, shape index: {}]   ;;  %s3901_s18 = inlined_call_operand.vmem [shape: f32[1,96], index: 18, kind: input, shape index: {}]   ;;  %s3902_s19 = inlined_call_operand.vmem [shape: f32[1,32], index: 19, kind: input, shape index: {}]   ;;  %s3903_s20 = inlined_call_operand.vmem [shape: f32[32,128], index: 20, kind: input, shape index: {}]   ;;  %s3904_s21 = inlined_call_operand.hbm [shape: f32[1,128], index: 21, kind: input, shape index: {}]   ;;  %s3905_s22 = inlined_call_operand.vmem [shape: f32[16,128], index: 22, kind: output, shape index: {}]  }
   0x1   :  { %3915 = sst [smem:[#allocation18_spill]] %s3883_s0 }
   0x2   :  { %3916 = sst [smem:[#allocation19_spill]] %s3884_s1 }
   0x3   :  { %3917 = sst [smem:[#allocation20_spill]] %s3885_s2 }
   0x4   :  { %3918 = sst [smem:[#allocation21_spill]] %s3886_s3 }
   0x5   :  { %3919 = sst [smem:[#allocation22_spill]] %s3887_s4 }
   0x6   :  { %3920 = sst [smem:[#allocation23_spill]] %s3888_s5 }
   0x7   :  { %3921 = sst [smem:[#allocation24_spill]] %s3889_s6 }
   0x8   :  { %3922 = sst [smem:[#allocation25_spill]] %s3905_s22 }
   0x9   :  { %27 = vsyncpa [#allocation5], 0 }
   0xa   :  { %28 = vsyncpa [#allocation7], 0 }
   0xb   :  { %29 = vsyncpa [#allocation10], 0 }
   0xc   :  { %30 = vsyncpa [#allocation13], 0  ;;  %s3174_s3 = smov [#allocation6]   ;;  %s3175_s29 = smov [#allocation9]  }
   0xd   :  { %s50_s28 = sshll.u32 %s3174_s3, 4  ;;  %s79_s30 = sshll.u32 %s3175_s29, 4  ;;  %s51_s28 = int_to_ptr.vmem [resolvable:$true] %s50_s28  ;;  %s3303_s30 = int_to_ptr.vmem [resolvable:$true] %s79_s30 }
   0xe   :  { %s3923_s23 = sld [smem:[#allocation20_spill]] }
  0x14   :  { %s3034_s1 = scalar_lea.hbm %s3923_s23, 128 }
  0x15   :  { %p3035_p0 = scmp.ne.s32.totalorder %s3923_s23, %s3034_s1  ;;  %p3038_p1 = scmp.lt.u32.totalorder %s3034_s1, %s3923_s23 }
  0x17   :  { %p3040_p2 = pnand %p3038_p1, %p3035_p0 }
  0x19   :  { %3043 = shalt.err (!%p3040_p2)
}
  0x1a   :  { %s3044_s26 = scalar_lea.vmem %s51_s28, 128  ;;  %p3049_p4 = scmp.lt.s32.totalorder %s51_s28, %s51_s28 }
  0x1b   :  { %p3045_p3 = scmp.ne.s32.totalorder %s51_s28, %s3044_s26  ;;  %p3050_p5 = scmp.lt.s32.totalorder %s3044_s26, %s3044_s26 }
  0x1d   :  { %p3051_p6 = por %p3050_p5, %p3049_p4 }
  0x1f   :  { %p3052_p7 = pnand %p3051_p6, %p3045_p3 }
  0x21   :  { %3055 = shalt.err (!%p3052_p7)
}
  0x22   :  { %s3911_s2 = smov 64   ;;  %s3913_s27 = smov 4  }
  0x23   :  { %56 = dma.hbm_to_vmem [thread:$0]  %s3923_s23, 128, %s51_s28, [#allocation7], %s3911_s2, %s3911_s2, %s3913_s27  }
  0x24   :  { %s3056_s1 = scalar_lea.hbm %s3890_s7, 16 }
  0x25   :  { %p3057_p8 = scmp.ne.s32.totalorder %s3890_s7, %s3056_s1  ;;  %p3060_p9 = scmp.lt.u32.totalorder %s3056_s1, %s3890_s7 }
  0x27   :  { %p3062_p10 = pnand %p3060_p9, %p3057_p8 }
  0x29   :  { %3065 = shalt.err (!%p3062_p10)
}
  0x2a   :  { %s3066_s26 = scalar_lea.vmem %s3303_s30, 16  ;;  %s3070_s28 = scalar_lea.vmem %s3303_s30, 32 }
  0x2b   :  { %p3067_p11 = scmp.ne.s32.totalorder %s3303_s30, %s3066_s26  ;;  %p3071_p12 = scmp.lt.s32.totalorder %s3303_s30, %s3303_s30 }
  0x2c   :  { %p3072_p13 = scmp.lt.s32.totalorder %s3070_s28, %s3066_s26 }
  0x2e   :  { %p3073_p0 = por %p3072_p13, %p3071_p12 }
  0x30   :  { %p3074_p1 = pnand %p3073_p0, %p3067_p11 }
  0x32   :  { %3077 = shalt.err (!%p3074_p1)
}
  0x33   :  { %82 = dma.hbm_to_vmem [thread:$0]  %s3890_s7, 16, %s3303_s30, [#allocation10]  }
  0x34   :  { %s3178_s29 = smov [#allocation4]   ;;  %s3179_s0 = smov [#allocation8]  }
  0x35   :  { %s38_s4 = sshll.u32 %s3178_s29, 4  ;;  %s67_s1 = sshll.u32 %s3179_s0, 4  ;;  %s39_s4 = int_to_ptr.vmem [resolvable:$true] %s38_s4  ;;  %s68_s1 = int_to_ptr.vmem [resolvable:$true] %s67_s1 }
  0x36   :  { %s3924_s6 = sld [smem:[#allocation19_spill]] }
  0x3c   :  { %s3078_s25 = scalar_lea.hbm %s3924_s6, 128 }
  0x3d   :  { %p3079_p2 = scmp.ne.s32.totalorder %s3924_s6, %s3078_s25  ;;  %p3082_p3 = scmp.lt.u32.totalorder %s3078_s25, %s3924_s6 }
  0x3f   :  { %p3084_p4 = pnand %p3082_p3, %p3079_p2 }
  0x41   :  { %3087 = shalt.err (!%p3084_p4)
}
  0x42   :  { %s3088_s7 = scalar_lea.vmem %s39_s4, 128  ;;  %p3093_p6 = scmp.lt.s32.totalorder %s39_s4, %s39_s4 }
  0x43   :  { %p3089_p5 = scmp.ne.s32.totalorder %s39_s4, %s3088_s7  ;;  %p3094_p7 = scmp.lt.s32.totalorder %s3088_s7, %s3088_s7 }
  0x45   :  { %p3095_p8 = por %p3094_p7, %p3093_p6 }
  0x47   :  { %p3096_p9 = pnand %p3095_p8, %p3089_p5 }
  0x49   :  { %3099 = shalt.err (!%p3096_p9)
}
  0x4a   :  { %s3925_s30 = smov 4   ;;  %s3926_s23 = smov 64  }
  0x4b   :  { %44 = dma.hbm_to_vmem [thread:$0]  %s3924_s6, 128, %s39_s4, [#allocation5], %s3926_s23, %s3926_s23, %s3925_s30  }
  0x4c   :  { %s3927_s27 = sld [smem:[#allocation23_spill]] }
  0x52   :  { %s3100_s5 = scalar_lea.hbm %s3927_s27, 16 }
  0x53   :  { %p3101_p10 = scmp.ne.s32.totalorder %s3927_s27, %s3100_s5  ;;  %p3104_p11 = scmp.lt.u32.totalorder %s3100_s5, %s3927_s27 }
  0x55   :  { %p3106_p12 = pnand %p3104_p11, %p3101_p10 }
  0x57   :  { %3109 = shalt.err (!%p3106_p12)
}
  0x58   :  { %s3110_s7 = scalar_lea.vmem %s68_s1, 16  ;;  %s3114_s22 = scalar_lea.vmem %s68_s1, 32 }
  0x59   :  { %p3111_p13 = scmp.ne.s32.totalorder %s68_s1, %s3110_s7  ;;  %p3115_p0 = scmp.lt.s32.totalorder %s68_s1, %s68_s1 }
  0x5a   :  { %p3116_p1 = scmp.lt.s32.totalorder %s3114_s22, %s3110_s7 }
  0x5c   :  { %p3117_p2 = por %p3116_p1, %p3115_p0 }
  0x5e   :  { %p3118_p3 = pnand %p3117_p2, %p3111_p13 }
  0x60   :  { %3121 = shalt.err (!%p3118_p3)
}
  0x61   :  { %70 = dma.hbm_to_vmem [thread:$0]  %s3927_s27, 16, %s68_s1, [#allocation7]  }
  0x62   :  { %s3180_s30 = smov [#allocation11]   ;;  %s3181_s29 = smov [#allocation12]  }
  0x63   :  { %s91_s3 = sshll.u32 %s3180_s30, 4  ;;  %s123_s2 = sshll.u32 %s3181_s29, 4  ;;  %s92_s3 = int_to_ptr.vmem [resolvable:$true] %s91_s3  ;;  %s124_s2 = int_to_ptr.vmem [resolvable:$true] %s123_s2 }
  0x64   :  { %s3122_s24 = scalar_lea.hbm %s3892_s9, 16 }
  0x65   :  { %p3123_p4 = scmp.ne.s32.totalorder %s3892_s9, %s3122_s24  ;;  %p3126_p5 = scmp.lt.u32.totalorder %s3122_s24, %s3892_s9 }
  0x67   :  { %p3128_p6 = pnand %p3126_p5, %p3123_p4 }
  0x69   :  { %3131 = shalt.err (!%p3128_p6)
}
  0x6a   :  { %s3132_s1 = scalar_lea.vmem %s92_s3, 16  ;;  %s3136_s27 = scalar_lea.vmem %s92_s3, 32 }
  0x6b   :  { %p3133_p7 = scmp.ne.s32.totalorder %s92_s3, %s3132_s1  ;;  %p3137_p8 = scmp.lt.s32.totalorder %s92_s3, %s92_s3 }
  0x6c   :  { %p3138_p9 = scmp.lt.s32.totalorder %s3136_s27, %s3132_s1 }
  0x6e   :  { %p3139_p10 = por %p3138_p9, %p3137_p8 }
  0x70   :  { %p3140_p11 = pnand %p3139_p10, %p3133_p7 }
  0x72   :  { %3143 = shalt.err (!%p3140_p11)
}
  0x73   :  { %94 = dma.hbm_to_vmem [thread:$0]  %s3892_s9, 16, %s92_s3, [#allocation10]  }
  0x74   :  { %s3144_s29 = scalar_lea.hbm %s3904_s21, 16 }
  0x75   :  { %p3145_p12 = scmp.ne.s32.totalorder %s3904_s21, %s3144_s29  ;;  %p3148_p13 = scmp.lt.u32.totalorder %s3144_s29, %s3904_s21 }
  0x77   :  { %p3150_p0 = pnand %p3148_p13, %p3145_p12 }
  0x79   :  { %3153 = shalt.err (!%p3150_p0)
}
  0x7a   :  { %s3154_s26 = scalar_lea.vmem %s124_s2, 16  ;;  %s3158_s22 = scalar_lea.vmem %s124_s2, 32 }
  0x7b   :  { %p3155_p1 = scmp.ne.s32.totalorder %s124_s2, %s3154_s26  ;;  %p3159_p2 = scmp.lt.s32.totalorder %s124_s2, %s124_s2 }
  0x7c   :  { %p3160_p3 = scmp.lt.s32.totalorder %s3158_s22, %s3154_s26 }
  0x7e   :  { %p3161_p4 = por %p3160_p3, %p3159_p2 }
  0x80   :  { %p3162_p5 = pnand %p3161_p4, %p3155_p1 }
  0x82   :  { %3165 = shalt.err (!%p3162_p5)
}
  0x83   :  { %126 = dma.hbm_to_vmem [thread:$0]  %s3904_s21, 16, %s124_s2, [#allocation13]  }
  0x84   :  { %3166 = dma.done.wait [#allocation5], 128  }
  0x85   :  { %3167 = vsyncadd [#allocation5], 4294967168 }
  0x86   :  { %3168 = dma.done.wait [#allocation7], 144  }
  0x87   :  { %3169 = vsyncadd [#allocation7], 4294967152 }
  0x88   :  { %3170 = dma.done.wait [#allocation10], 32  }
  0x89   :  { %3171 = vsyncadd [#allocation10], 4294967264 }
  0x8a   :  { %3172 = dma.done.wait [#allocation13], 16  }
  0x8b   :  { %3173 = vsyncadd [#allocation13], 4294967280  ;;  %v3182_v0 = vmov 0.0   ;;  %vm3183_vm0 = vmmov 0   ;;  %s3928_s28 = sld [smem:[#allocation21_spill]]  ;;  %vm169_vm1 = vcmask 261120  }
  0x8c   :  { %2679 = vmatprep.subr.bf16.mxu0 %v3182_v0  ;;  %2683 = vmatprep.mubr.msk.bf16.mxu0 %vm3183_vm0, %v3182_v0  ;;  %s3929_s6 = sld [smem:[#allocation18_spill]]  ;;  %v2923_v9 = vld [vmem:[#allocation4] sm:$0xff]   ;;  %s3184_s30 = smov 96   ;;  %vm231_vm2 = vcmask 130048   ;;  %v2926_v23 = vld [vmem:[#allocation6] sm:$0xff]   ;;  %vm813_vm3 = vcmask 779264  }
  0x8d   :  { %2687 = vmatprep.subr.bf16.mxu1 %v3182_v0  ;;  %2689 = vmatprep.mubr.msk.bf16.mxu1 %vm3183_vm0, %v3182_v0  ;;  %s3930_s5 = sld [smem:[#allocation24_spill]]  ;;  %s3931_s9 = sld [smem:[#allocation22_spill]]  ;;  %v2927_v29 = vld [vmem:[%s3891_s8] sm:$0xff]   ;;  %v2538_v30 = vld [vmem:[#allocation8] ss:$0 sm:$0xff]  ;;  %v2928_v34 = vld [vmem:[%s3891_s8 + $0x8] sm:$0xff]  }
  0x8e   :  { %v2536_v41 = vld [vmem:[#allocation9] ss:$0 sm:$0xff]  ;;  %v2929_v54 = vld [vmem:[%s3893_s10] sm:$0xff]   ;;  %v2544_v55 = vld [vmem:[#allocation11] ss:$0 sm:$0xff]  ;;  %vm925_vm4 = vcmask 254976  }
  0x91   :  { %v2920_v1 = vld [vmem:[%s3928_s28] sm:$0xff]   ;;  %v2921_v2 = vld [vmem:[%s3928_s28 + $0x8] sm:$0xff]  }
  0x92   :  { %2680 = vmatpush3.bf16.msra.mxu0 %v2920_v1  ;;  %v2922_v3 = vld [vmem:[%s3929_s6] sm:$0xff]   ;;  %s3932_s6 = sld [smem:[#allocation25_spill]] }
  0x93   :  { %2681 = vmatprep.subr.bf16.mxu0 %v3182_v0  ;;  %v2924_v10 = vld [vmem:[%s3930_s5] sm:$0xff]   ;;  %v2925_v11 = vld [vmem:[%s3930_s5 + $0x8] sm:$0xff]  }
  0x94   :  { %v2530_v12 = vld [vmem:[%s3931_s9] ss:$0 sm:$0xff] }
  0x96   :  { %2682 = vmatpush3.bf16.msra.mxu0 %v2921_v2 }
  0x97   :  { %2701 = vmatprep.subr.bf16.mxu0 %v3182_v0 }
  0x99   :  { %2684 = vmatmul.mubr.msk.bf16.vlgmr.msra.gmra.mrb[0].mxu0 %vm169_vm1, %v2922_v3  ;;  %v2930_v3 = vld [vmem:[%s3895_s12] sm:$0xff]  }
  0x9a   :  { %2703 = vmatprep.mubr.msk.bf16.mxu0 %vm3183_vm0, %v3182_v0 }
 0x16c   :  { %v207_v4 = vpop.f32.mrb[0].mxu0 }
 0x16d   :  { %v2685_v5 = vpop.f32.mrb[1].mxu0 }
 0x16e   :  { %v210_v6 = vpop.f32.mrb[2].mxu0 }
 0x16f   :  { %v219_v7 = vpack.c.bf16 %v210_v6, %v207_v4  ;;  %v2686_v8 = vpop.f32.mrb[3].mxu0  ;;  %v2931_v4 = vld [vmem:[%s3894_s11] sm:$0xff]  }
 0x170   :  { %v3483_v8 = vld [vmem:[%s3896_s13 + $0x8] sm:$0xff]  }
 0x171   :  { %401 = vrot.lane.b32.xlu0 %v219_v7, %s3184_s30  ;;  %2688 = vmatpush3.bf16.msra.mxu1 %v219_v7  ;;  %v3473_v7 = vld [vmem:[%s3896_s13] sm:$0xff]  }
 0x172   :  { %2693 = vmatprep.subr.bf16.mxu1 %v3182_v0 }
 0x174   :  { %2690 = vmatmul.mubr.msk.bf16.vlgmr.msra.gmra.mrb[0].mxu1 %vm231_vm2, %v2923_v9 }
 0x175   :  { %2697 = vmatprep.mubr.msk.bf16.mxu1 %vm3183_vm0, %v3182_v0  ;;  %2694 = vmatpush3.bf16.msra.mxu1 %v2924_v10 }
 0x176   :  { %2695 = vmatprep.subr.bf16.mxu1 %v3182_v0 }
 0x179   :  { %2696 = vmatpush3.bf16.msra.mxu1 %v2925_v11 }
 0x17a   :  { %2707 = vmatprep.subr.bf16.mxu1 %v3182_v0 }
 0x1e3   :  { %v402_v22 = vpop.permute.xlu0 %401 }
 0x247   :  { %v269_v13 = vpop.f32.mrb[0].mxu1 }
 0x248   :  { %v270_v14 = vadd.f32 %v2530_v12, %v269_v13  ;;  %v2691_v15 = vpop.f32.mrb[1].mxu1 }
 0x249   :  { %v272_v16 = vpop.f32.mrb[2].mxu1  ;;  %v3185_v15 = vmov 0  }
 0x24a   :  { %v273_v17 = vadd.f32 %v2530_v12, %v272_v16  ;;  %v2692_v18 = vpop.f32.mrb[3].mxu1  ;;  %v276_v19 = vmax.f32 %v270_v14, 0.0 }
 0x24c   :  { %v277_v20 = vmax.f32 %v273_v17, 0.0 }
 0x24e   :  { %v278_v21 = vpack.c.bf16 %v277_v20, %v276_v19  ;;  %v3186_v20 = vmov 1983009808  }
 0x250   :  { %2698 = vmatmul.mubr.msk.bf16.vlgmr.msra.gmra.mrb[4].mxu1 %vm169_vm1, %v278_v21  ;;  %v773_v21 = vunpack.c.l.s4 %v3186_v20 }
 0x251   :  { %2708 = vmatpush3.bf16.msra.mxu1 %v402_v22  ;;  %2709 = vmatprep.mubr.msk.bf16.mxu1 %vm3183_vm0, %v3182_v0  ;;  %v775_v22 = vlaneseq }
 0x252   :  { %2721 = vmatprep.subr.bf16.mxu1 %v3182_v0 }
 0x258   :  { %2710 = vmatmul.mubr.msk.bf16.vlgmr.msra.gmra.mrb[8].mxu1 %vm231_vm2, %v2926_v23 }
 0x259   :  { %2723 = vmatprep.mubr.msk.bf16.mxu1 %vm3183_vm0, %v3182_v0 }
 0x323   :  { %v332_v24 = vpop.f32.mrb[4].mxu1 }
 0x324   :  { %v2699_v25 = vpop.f32.mrb[5].mxu1 }
 0x325   :  { %v335_v26 = vpop.f32.mrb[6].mxu1 }
 0x326   :  { %v339_v27 = vpack.c.bf16 %v335_v26, %v332_v24  ;;  %v2700_v28 = vpop.f32.mrb[7].mxu1  ;;  %v776_v24 = vshrl.u32 %v775_v22, 7  ;;  %v2553_v26 = vld [vmem:[%s3897_s14] ss:$0 sm:$0xff]  ;;  %s3187_s14 = smov 32  }
 0x328   :  { %2702 = vmatpush3.bf16.msra.mxu0 %v339_v27 }
 0x329   :  { %2713 = vmatprep.subr.bf16.mxu0 %v3182_v0 }
 0x32b   :  { %2704 = vmatmul.mubr.msk.bf16.vlgmr.msra.gmra.mrb[4].mxu0 %vm231_vm2, %v2923_v9  ;;  %v441_v31 = vpop.f32.mrb[8].mxu1  ;;  %v2554_v9 = vld [vmem:[%s3898_s15] ss:$0 sm:$0xff] }
 0x32c   :  { %v442_v32 = vadd.f32 %v2538_v30, %v441_v31  ;;  %v2711_v33 = vpop.f32.mrb[9].mxu1  ;;  %2714 = vmatpush3.bf16.msra.mxu0 %v2927_v29  ;;  %2717 = vmatprep.mubr.msk.bf16.mxu0 %vm3183_vm0, %v3182_v0 }
 0x32d   :  { %v444_v35 = vpop.f32.mrb[10].mxu1  ;;  %2715 = vmatprep.subr.bf16.mxu0 %v3182_v0  ;;  %895 = vrot.lane.b32.xlu0 %v2554_v9, %s3926_s23 }
 0x32e   :  { %v445_v36 = vadd.f32 %v2538_v30, %v444_v35  ;;  %v2712_v37 = vpop.f32.mrb[11].mxu1  ;;  %v448_v38 = vmax.f32 %v442_v32, 0.0 }
 0x330   :  { %v449_v39 = vmax.f32 %v445_v36, 0.0  ;;  %2716 = vmatpush3.bf16.msra.mxu0 %v2928_v34 }
 0x331   :  { %2727 = vmatprep.subr.bf16.mxu0 %v3182_v0 }
 0x332   :  { %v450_v40 = vpack.c.bf16 %v449_v39, %v448_v38 }
 0x334   :  { %2718 = vmatmul.mubr.msk.bf16.vlgmr.msra.gmra.mrb[8].mxu0 %vm169_vm1, %v450_v40 }
 0x335   :  { %2729 = vmatprep.mubr.msk.bf16.mxu0 %vm3183_vm0, %v3182_v0 }
 0x39f   :  { %v3511_v37 = vpop.permute.xlu0 %895 }
 0x3fe   :  { %v381_v42 = vpop.f32.mrb[4].mxu0 }
 0x3ff   :  { %v382_v43 = vadd.f32 %v2536_v41, %v381_v42  ;;  %v2705_v44 = vpop.f32.mrb[5].mxu0 }
 0x400   :  { %v384_v45 = vpop.f32.mrb[6].mxu0 }
 0x401   :  { %v385_v46 = vadd.f32 %v2536_v41, %v384_v45  ;;  %v2706_v47 = vpop.f32.mrb[7].mxu0 }
 0x403   :  { %v562_v48 = vpack.c.bf16 %v385_v46, %v382_v43 }
 0x405   :  { %2728 = vmatpush3.bf16.msra.mxu0 %v562_v48 }
 0x406   :  { %2739 = vmatprep.subr.bf16.mxu0 %v3182_v0 }
 0x407   :  { %v504_v49 = vpop.f32.mrb[8].mxu0 }
 0x408   :  { %v2719_v50 = vpop.f32.mrb[9].mxu0  ;;  %2730 = vmatmul.mubr.msk.bf16.vlgmr.msra.gmra.mrb[12].mxu0 %vm231_vm2, %v2929_v54 }
 0x409   :  { %v507_v51 = vpop.f32.mrb[10].mxu0  ;;  %2741 = vmatprep.mubr.msk.bf16.mxu0 %vm3183_vm0, %v3182_v0  ;;  %2740 = vmatpush3.bf16.msra.mxu0 %v2930_v3 }
 0x40a   :  { %v511_v52 = vpack.c.bf16 %v507_v51, %v504_v49  ;;  %v2720_v53 = vpop.f32.mrb[11].mxu0  ;;  %2751 = vmatprep.subr.bf16.mxu0 %v3182_v0 }
 0x40c   :  { %2722 = vmatpush3.bf16.msra.mxu1 %v511_v52 }
 0x40d   :  { %2733 = vmatprep.subr.bf16.mxu1 %v3182_v0 }
 0x40f   :  { %2724 = vmatmul.mubr.msk.bf16.vlgmr.msra.gmra.mrb[12].mxu1 %vm231_vm2, %v2926_v23  ;;  %v774_v23 = vunpack.c.0.s8 %v773_v21 }
 0x410   :  { %2735 = vmatprep.mubr.msk.bf16.mxu1 %vm3183_vm0, %v3182_v0 }
 0x411   :  { %v3508_v28 = vsub.s32 %v774_v23, %v776_v24 }
 0x4db   :  { %v605_v63 = vpop.f32.mrb[12].mxu0 }
 0x4dc   :  { %v2731_v1 = vpop.f32.mrb[13].mxu0 }
 0x4dd   :  { %v608_v2 = vpop.f32.mrb[14].mxu0 }
 0x4de   :  { %v654_v5 = vpack.c.bf16 %v608_v2, %v605_v63  ;;  %v2732_v6 = vpop.f32.mrb[15].mxu0 }
 0x4e2   :  { %v553_v56 = vpop.f32.mrb[12].mxu1 }
 0x4e3   :  { %v2725_v57 = vpop.f32.mrb[13].mxu1  ;;  %v554_v59 = vadd.f32 %v2544_v55, %v553_v56 }
 0x4e4   :  { %v556_v58 = vpop.f32.mrb[14].mxu1 }
 0x4e5   :  { %v557_v60 = vadd.f32 %v2544_v55, %v556_v58  ;;  %v2726_v61 = vpop.f32.mrb[15].mxu1 }
 0x4e7   :  { %v612_v62 = vpack.c.bf16 %v557_v60, %v554_v59 }
 0x4e9   :  { %2734 = vmatpush3.bf16.msra.mxu1 %v612_v62 }
 0x4ea   :  { %2745 = vmatprep.subr.bf16.mxu1 %v3182_v0 }
 0x4ec   :  { %2736 = vmatmul.mubr.msk.bf16.vlgmr.msra.gmra.mrb[16].mxu1 %vm231_vm2, %v2929_v54 }
 0x4ed   :  { %2747 = vmatprep.mubr.msk.bf16.mxu1 %vm3183_vm0, %v3182_v0  ;;  %2746 = vmatpush3.bf16.msra.mxu1 %v2931_v4 }
 0x4ee   :  { %2759 = vmatprep.subr.bf16.mxu1 %v3182_v0 }
 0x4f4   :  { %2748 = vmatmul.mubr.msk.bf16.vlgmr.msra.gmra.mrb[20].mxu1 %vm231_vm2, %v654_v5 }
 0x4f5   :  { %2760 = vmatpush3.bf16.msra.mxu1 %v3473_v7  ;;  %2763 = vmatprep.mubr.msk.bf16.mxu1 %vm3183_vm0, %v3182_v0 }
 0x4f6   :  { %2761 = vmatprep.subr.bf16.mxu1 %v3182_v0 }
 0x4f9   :  { %2762 = vmatpush3.bf16.msra.mxu1 %v3483_v8 }
 0x4fa   :  { %2775 = vmatprep.subr.bf16.mxu1 %v3182_v0 }
 0x5bf   :  { %v647_v10 = vpop.f32.mrb[16].mxu1 }
 0x5c0   :  { %v2737_v11 = vpop.f32.mrb[17].mxu1 }
 0x5c1   :  { %v650_v12 = vpop.f32.mrb[18].mxu1 }
 0x5c2   :  { %v657_v13 = vpack.c.bf16 %v650_v12, %v647_v10  ;;  %v2738_v14 = vpop.f32.mrb[19].mxu1 }
 0x5c4   :  { %2742 = vmatmul.mubr.msk.bf16.vlgmr.msra.gmra.mrb[16].mxu0 %vm231_vm2, %v657_v13 }
 0x5c5   :  { %2752 = vmatpush3.bf16.msra.mxu0 %v3473_v7  ;;  %2755 = vmatprep.mubr.msk.bf16.mxu0 %vm3183_vm0, %v3182_v0 }
 0x5c6   :  { %2753 = vmatprep.subr.bf16.mxu0 %v3182_v0 }
 0x5c7   :  { %v753_v16 = vpop.f32.mrb[20].mxu1 }
 0x5c8   :  { %v2749_v17 = vpop.f32.mrb[21].mxu1 }
 0x5c9   :  { %2754 = vmatpush3.bf16.msra.mxu0 %v3483_v8  ;;  %v756_v18 = vpop.f32.mrb[22].mxu1 }
 0x5ca   :  { %2767 = vmatprep.subr.bf16.mxu0 %v3182_v0  ;;  %v2750_v19 = vpop.f32.mrb[23].mxu1 }
 0x5cc   :  { %2756 = vmatmul.mubr.bf16.vlgmr.msra.gmra.mrb[20].mxu0 %v3185_v15 }
 0x5cd   :  { %2768 = vmatpush3.bf16.msra.mxu0 %v3473_v7  ;;  %2771 = vmatprep.mubr.msk.bf16.mxu0 %vm3183_vm0, %v3182_v0 }
 0x5ce   :  { %2769 = vmatprep.subr.bf16.mxu0 %v3182_v0 }
 0x5d1   :  { %2770 = vmatpush3.bf16.msra.mxu0 %v3483_v8 }
 0x5d2   :  { %2783 = vmatprep.subr.bf16.mxu0 %v3182_v0 }
 0x697   :  { %v703_v25 = vpop.f32.mrb[16].mxu0 }
 0x698   :  { %v754_v27 = vadd.f32 %v753_v16, %v703_v25  ;;  %v2743_v29 = vpop.f32.mrb[17].mxu0 }
 0x699   :  { %v706_v30 = vpop.f32.mrb[18].mxu0 }
 0x69a   :  { %v767_v31 = vadd.f32 %v2553_v26, %v754_v27  ;;  %v2744_v32 = vpop.f32.mrb[19].mxu0  ;;  %v757_v33 = vadd.f32 %v756_v18, %v706_v30 }
 0x69c   :  { %v771_v34 = vcombine.high %v767_v31, %v767_v31  ;;  %v778_v35 = vrot.slane %v767_v31, %v3508_v28  ;;  %v768_v36 = vadd.f32 %v2553_v26, %v757_v33 }
 0x69e   :  { %v785_v38 = vrot.slane %v771_v34, %v3508_v28  ;;  %v786_v39 = vcombine.high %v778_v35, %v778_v35  ;;  %814 = vst.msk [vmem:[#allocation2] sm:$0x3] %vm813_vm3, %v778_v35  ;;  %v788_v40 = vcombine.high %v768_v36, %v768_v36  ;;  %v795_v41 = vrot.slane %v768_v36, %v3508_v28 }
 0x69f   :  { %v881_v42 = vpop.f32.mrb[20].mxu0 }
 0x6a0   :  { %v787_v43 = vcombine.high %v785_v38, %v785_v38  ;;  %815 = vst.msk [vmem:[#allocation2 + $0x2] sm:$0x3] %vm813_vm3, %v786_v39  ;;  %816 = vst.msk [vmem:[#allocation2 + $0x4] sm:$0x3] %vm813_vm3, %v785_v38  ;;  %v802_v44 = vrot.slane %v788_v40, %v3508_v28  ;;  %v803_v45 = vcombine.high %v795_v41, %v795_v41  ;;  %v2757_v47 = vpop.f32.mrb[21].mxu0 }
 0x6a1   :  { %818 = vst.msk [vmem:[#allocation2 + $0x8] sm:$0x3] %vm813_vm3, %v795_v41  ;;  %v898_v46 = vadd.f32 %v3511_v37, %v881_v42  ;;  %v884_v48 = vpop.f32.mrb[22].mxu0 }
 0x6a2   :  { %817 = vst.msk [vmem:[#allocation2 + $0x6] sm:$0x3] %vm813_vm3, %v787_v43  ;;  %v804_v49 = vcombine.high %v802_v44, %v802_v44  ;;  %819 = vst.msk [vmem:[#allocation2 + $0xa] sm:$0x3] %vm813_vm3, %v803_v45  ;;  %v2758_v50 = vpop.f32.mrb[23].mxu0 }
 0x6a3   :  { %820 = vst.msk [vmem:[#allocation2 + $0xc] sm:$0x3] %vm813_vm3, %v802_v44  ;;  %900 = vrot.lane.b32.xlu1 %v898_v46, %s3926_s23 }
 0x6a4   :  { %821 = vst.msk [vmem:[#allocation2 + $0xe] sm:$0x3] %vm813_vm3, %v804_v49 }
 0x6a5   :  { %v887_v51 = vld [vmem:[#allocation2] sm:$0x3] }
 0x6a6   :  { %v888_v52 = vadd.f32 %v887_v51, %v881_v42 }
 0x6a7   :  { %v975_v13 = vld [vmem:[#allocation2 + $0x2] sm:$0x3]  ;;  %v1060_v39 = vld [vmem:[#allocation2 + $0x4] sm:$0x3] }
 0x6a8   :  { %v2557_v53 = vmul.f32 -1.442695, %v888_v52 }
 0x6aa   :  { %2938 = vpow2.f32 %v2557_v53 }
 0x6b4   :  { %v2939_v54 = vpop.eup %2938 }
 0x6b5   :  { %v892_v55 = vadd.f32 1.0, %v2939_v54 }
 0x6b7   :  { %2940 = vrcp.f32 %v892_v55 }
 0x6c1   :  { %v2941_v56 = vpop.eup %2940 }
 0x715   :  { %v901_v57 = vpop.permute.xlu1 %900 }
 0x716   :  { %v903_v58 = vmul.f32 %v2941_v56, %v901_v57 }
 0x718   :  { %905 = vrot.lane.b32.xlu1 %v903_v58, %s3926_s23 }
 0x78a   :  { %v906_v59 = vpop.permute.xlu1 %905 }
 0x78b   :  { %v908_v60 = vadd.f32 %v906_v59, %v887_v51 }
 0x78d   :  { %2942 = vtanh.f32 %v908_v60 }
 0x797   :  { %v2943_v61 = vpop.eup %2942 }
 0x798   :  { %v910_v62 = vsub.f32 0.0, %v2943_v61 }
 0x79a   :  { %912 = vrot.lane.b32.xlu0 %v910_v62, %s3184_s30  ;;  %v1145_v62 = vld [vmem:[#allocation2 + $0x6] sm:$0x3] }
 0x80c   :  { %v913_v63 = vpop.permute.xlu0 %912 }
 0x80d   :  { %v915_v1 = vmul.f32 %v2941_v56, %v913_v63 }
 0x80f   :  { %917 = vrot.lane.b32.xlu1 %v915_v1, %s3187_s14 }
 0x881   :  { %v918_v2 = vpop.permute.xlu1 %917 }
 0x882   :  { %v3529_v3 = vadd.f32 %v2943_v61, %v918_v2 }
 0x884   :  { %v927_v4 = vpack.c.bf16 %v3529_v3, %v3529_v3 }
 0x886   :  { %929 = vrot.lane.b32.xlu0 %v927_v4, %s3926_s23 }
 0x8f8   :  { %v930_v5 = vpop.permute.xlu0 %929 }
 0x8f9   :  { %2764 = vmatmul.mubr.msk.bf16.vlgmr.msra.gmra.mrb[24].mxu1 %vm169_vm1, %v930_v5 }
 0x8fa   :  { %2776 = vmatpush3.bf16.msra.mxu1 %v3473_v7  ;;  %2779 = vmatprep.mubr.msk.bf16.mxu1 %vm3183_vm0, %v3182_v0 }
 0x8fb   :  { %2777 = vmatprep.subr.bf16.mxu1 %v3182_v0 }
 0x8fe   :  { %2778 = vmatpush3.bf16.msra.mxu1 %v3483_v8 }
 0x8ff   :  { %2791 = vmatprep.subr.bf16.mxu1 %v3182_v0 }
 0x9cc   :  { %v968_v6 = vpop.f32.mrb[24].mxu1 }
 0x9cd   :  { %v2765_v9 = vpop.f32.mrb[25].mxu1  ;;  %v983_v10 = vadd.f32 %v968_v6, %v3511_v37  ;;  %v976_v14 = vadd.f32 %v975_v13, %v968_v6 }
 0x9ce   :  { %v971_v11 = vpop.f32.mrb[26].mxu1 }
 0x9cf   :  { %985 = vrot.lane.b32.xlu1 %v983_v10, %s3926_s23  ;;  %v2766_v12 = vpop.f32.mrb[27].mxu1  ;;  %v2559_v16 = vmul.f32 -1.442695, %v976_v14 }
 0x9d1   :  { %2944 = vpow2.f32 %v2559_v16 }
 0x9db   :  { %v2945_v17 = vpop.eup %2944 }
 0x9dc   :  { %v980_v18 = vadd.f32 1.0, %v2945_v17 }
 0x9de   :  { %2946 = vrcp.f32 %v980_v18 }
 0x9e8   :  { %v2947_v19 = vpop.eup %2946 }
 0xa41   :  { %v986_v20 = vpop.permute.xlu1 %985 }
 0xa42   :  { %v988_v21 = vmul.f32 %v2947_v19, %v986_v20 }
 0xa44   :  { %990 = vrot.lane.b32.xlu0 %v988_v21, %s3926_s23 }
 0xab6   :  { %v991_v22 = vpop.permute.xlu0 %990 }
 0xab7   :  { %v993_v23 = vadd.f32 %v991_v22, %v975_v13 }
 0xab9   :  { %2948 = vtanh.f32 %v993_v23 }
 0xac3   :  { %v2949_v24 = vpop.eup %2948 }
 0xac4   :  { %v995_v25 = vsub.f32 %v3529_v3, %v2949_v24 }
 0xac6   :  { %997 = vrot.lane.b32.xlu1 %v995_v25, %s3184_s30 }
 0xb38   :  { %v998_v26 = vpop.permute.xlu1 %997 }
 0xb39   :  { %v1000_v27 = vmul.f32 %v2947_v19, %v998_v26  ;;  %v1230_v26 = vld [vmem:[#allocation2 + $0x8] sm:$0x3] }
 0xb3b   :  { %1002 = vrot.lane.b32.xlu0 %v1000_v27, %s3187_s14 }
 0xbad   :  { %v1003_v29 = vpop.permute.xlu0 %1002 }
 0xbae   :  { %v3547_v30 = vadd.f32 %v2949_v24, %v1003_v29 }
 0xbb0   :  { %v1012_v31 = vpack.c.bf16 %v3547_v30, %v3547_v30 }
 0xbb2   :  { %1014 = vrot.lane.b32.xlu1 %v1012_v31, %s3926_s23 }
 0xc24   :  { %v1015_v32 = vpop.permute.xlu1 %1014 }
 0xc25   :  { %2772 = vmatmul.mubr.msk.bf16.vlgmr.msra.gmra.mrb[24].mxu0 %vm169_vm1, %v1015_v32 }
 0xc26   :  { %2784 = vmatpush3.bf16.msra.mxu0 %v3473_v7  ;;  %2787 = vmatprep.mubr.msk.bf16.mxu0 %vm3183_vm0, %v3182_v0 }
 0xc27   :  { %2785 = vmatprep.subr.bf16.mxu0 %v3182_v0 }
 0xc2a   :  { %2786 = vmatpush3.bf16.msra.mxu0 %v3483_v8 }
 0xc2b   :  { %2799 = vmatprep.subr.bf16.mxu0 %v3182_v0 }
 0xcf8   :  { %v1053_v33 = vpop.f32.mrb[24].mxu0 }
 0xcf9   :  { %v2773_v34 = vpop.f32.mrb[25].mxu0  ;;  %v1068_v35 = vadd.f32 %v1053_v33, %v3511_v37  ;;  %v1061_v40 = vadd.f32 %v1060_v39, %v1053_v33 }
 0xcfa   :  { %v1056_v36 = vpop.f32.mrb[26].mxu0 }
 0xcfb   :  { %1070 = vrot.lane.b32.xlu0 %v1068_v35, %s3926_s23  ;;  %v2774_v38 = vpop.f32.mrb[27].mxu0  ;;  %v2561_v41 = vmul.f32 -1.442695, %v1061_v40 }
 0xcfd   :  { %2950 = vpow2.f32 %v2561_v41 }
 0xd07   :  { %v2951_v42 = vpop.eup %2950 }
 0xd08   :  { %v1065_v43 = vadd.f32 1.0, %v2951_v42 }
 0xd0a   :  { %2952 = vrcp.f32 %v1065_v43 }
 0xd14   :  { %v2953_v44 = vpop.eup %2952 }
 0xd6d   :  { %v1071_v45 = vpop.permute.xlu0 %1070 }
 0xd6e   :  { %v1073_v46 = vmul.f32 %v2953_v44, %v1071_v45 }
 0xd70   :  { %1075 = vrot.lane.b32.xlu1 %v1073_v46, %s3926_s23 }
 0xde2   :  { %v1076_v47 = vpop.permute.xlu1 %1075 }
 0xde3   :  { %v1078_v48 = vadd.f32 %v1076_v47, %v1060_v39 }
 0xde5   :  { %2954 = vtanh.f32 %v1078_v48 }
 0xdef   :  { %v2955_v49 = vpop.eup %2954 }
 0xdf0   :  { %v1080_v50 = vsub.f32 %v3547_v30, %v2955_v49 }
 0xdf2   :  { %1082 = vrot.lane.b32.xlu0 %v1080_v50, %s3184_s30 }
 0xe64   :  { %v1083_v51 = vpop.permute.xlu0 %1082 }
 0xe65   :  { %v1085_v52 = vmul.f32 %v2953_v44, %v1083_v51 }
 0xe67   :  { %1087 = vrot.lane.b32.xlu1 %v1085_v52, %s3187_s14  ;;  %v1315_v52 = vld [vmem:[#allocation2 + $0xa] sm:$0x3] }
 0xed9   :  { %v1088_v53 = vpop.permute.xlu1 %1087 }
 0xeda   :  { %v3565_v54 = vadd.f32 %v2955_v49, %v1088_v53 }
 0xedc   :  { %v1097_v55 = vpack.c.bf16 %v3565_v54, %v3565_v54 }
 0xede   :  { %1099 = vrot.lane.b32.xlu0 %v1097_v55, %s3926_s23 }
 0xf50   :  { %v1100_v56 = vpop.permute.xlu0 %1099 }
 0xf51   :  { %2780 = vmatmul.mubr.msk.bf16.vlgmr.msra.gmra.mrb[28].mxu1 %vm169_vm1, %v1100_v56 }
 0xf52   :  { %2792 = vmatpush3.bf16.msra.mxu1 %v3473_v7  ;;  %2795 = vmatprep.mubr.msk.bf16.mxu1 %vm3183_vm0, %v3182_v0 }
 0xf53   :  { %2793 = vmatprep.subr.bf16.mxu1 %v3182_v0 }
 0xf56   :  { %2794 = vmatpush3.bf16.msra.mxu1 %v3483_v8 }
 0xf57   :  { %2807 = vmatprep.subr.bf16.mxu1 %v3182_v0 }
0x1024   :  { %v1138_v57 = vpop.f32.mrb[28].mxu1 }
0x1025   :  { %v2781_v58 = vpop.f32.mrb[29].mxu1  ;;  %v1153_v59 = vadd.f32 %v1138_v57, %v3511_v37  ;;  %v1146_v63 = vadd.f32 %v1145_v62, %v1138_v57 }
0x1026   :  { %v1141_v60 = vpop.f32.mrb[30].mxu1 }
0x1027   :  { %1155 = vrot.lane.b32.xlu1 %v1153_v59, %s3926_s23  ;;  %v2782_v61 = vpop.f32.mrb[31].mxu1  ;;  %v2563_v1 = vmul.f32 -1.442695, %v1146_v63 }
0x1029   :  { %2956 = vpow2.f32 %v2563_v1 }
0x1033   :  { %v2957_v2 = vpop.eup %2956 }
0x1034   :  { %v1150_v4 = vadd.f32 1.0, %v2957_v2 }
0x1036   :  { %2958 = vrcp.f32 %v1150_v4 }
0x1040   :  { %v2959_v5 = vpop.eup %2958 }
0x1099   :  { %v1156_v6 = vpop.permute.xlu1 %1155 }
0x109a   :  { %v1158_v9 = vmul.f32 %v2959_v5, %v1156_v6 }
0x109c   :  { %1160 = vrot.lane.b32.xlu0 %v1158_v9, %s3926_s23 }
0x110e   :  { %v1161_v10 = vpop.permute.xlu0 %1160 }
0x110f   :  { %v1163_v11 = vadd.f32 %v1161_v10, %v1145_v62 }
0x1111   :  { %2960 = vtanh.f32 %v1163_v11 }
0x111b   :  { %v2961_v12 = vpop.eup %2960 }
0x111c   :  { %v1165_v13 = vsub.f32 %v3565_v54, %v2961_v12 }
0x111e   :  { %1167 = vrot.lane.b32.xlu1 %v1165_v13, %s3184_s30 }
0x1190   :  { %v1168_v14 = vpop.permute.xlu1 %1167 }
0x1191   :  { %v1170_v16 = vmul.f32 %v2959_v5, %v1168_v14  ;;  %v1400_v14 = vld [vmem:[#allocation2 + $0xc] sm:$0x3] }
0x1193   :  { %1172 = vrot.lane.b32.xlu0 %v1170_v16, %s3187_s14 }
0x1205   :  { %v1173_v17 = vpop.permute.xlu0 %1172 }
0x1206   :  { %v3583_v18 = vadd.f32 %v2961_v12, %v1173_v17 }
0x1208   :  { %v1182_v19 = vpack.c.bf16 %v3583_v18, %v3583_v18 }
0x120a   :  { %1184 = vrot.lane.b32.xlu1 %v1182_v19, %s3926_s23 }
0x127c   :  { %v1185_v20 = vpop.permute.xlu1 %1184 }
0x127d   :  { %2788 = vmatmul.mubr.msk.bf16.vlgmr.msra.gmra.mrb[28].mxu0 %vm169_vm1, %v1185_v20 }
0x127e   :  { %2800 = vmatpush3.bf16.msra.mxu0 %v3473_v7  ;;  %2803 = vmatprep.mubr.msk.bf16.mxu0 %vm3183_vm0, %v3182_v0 }
0x127f   :  { %2801 = vmatprep.subr.bf16.mxu0 %v3182_v0 }
0x1282   :  { %2802 = vmatpush3.bf16.msra.mxu0 %v3483_v8 }
0x1283   :  { %2815 = vmatprep.subr.bf16.mxu0 %v3182_v0 }
0x1350   :  { %v1223_v21 = vpop.f32.mrb[28].mxu0 }
0x1351   :  { %v2789_v22 = vpop.f32.mrb[29].mxu0  ;;  %v1238_v23 = vadd.f32 %v1223_v21, %v3511_v37  ;;  %v1231_v27 = vadd.f32 %v1230_v26, %v1223_v21 }
0x1352   :  { %v1226_v24 = vpop.f32.mrb[30].mxu0 }
0x1353   :  { %1240 = vrot.lane.b32.xlu0 %v1238_v23, %s3926_s23  ;;  %v2790_v25 = vpop.f32.mrb[31].mxu0  ;;  %v2565_v29 = vmul.f32 -1.442695, %v1231_v27 }
0x1355   :  { %2962 = vpow2.f32 %v2565_v29 }
0x135f   :  { %v2963_v31 = vpop.eup %2962 }
0x1360   :  { %v1235_v32 = vadd.f32 1.0, %v2963_v31 }
0x1362   :  { %2964 = vrcp.f32 %v1235_v32 }
0x136c   :  { %v2965_v33 = vpop.eup %2964 }
0x13c5   :  { %v1241_v34 = vpop.permute.xlu0 %1240 }
0x13c6   :  { %v1243_v35 = vmul.f32 %v2965_v33, %v1241_v34 }
0x13c8   :  { %1245 = vrot.lane.b32.xlu1 %v1243_v35, %s3926_s23 }
0x143a   :  { %v1246_v36 = vpop.permute.xlu1 %1245 }
0x143b   :  { %v1248_v38 = vadd.f32 %v1246_v36, %v1230_v26 }
0x143d   :  { %2966 = vtanh.f32 %v1248_v38 }
0x1447   :  { %v2967_v39 = vpop.eup %2966 }
0x1448   :  { %v1250_v40 = vsub.f32 %v3583_v18, %v2967_v39 }
0x144a   :  { %1252 = vrot.lane.b32.xlu0 %v1250_v40, %s3184_s30 }
0x14bc   :  { %v1253_v41 = vpop.permute.xlu0 %1252 }
0x14bd   :  { %v1255_v42 = vmul.f32 %v2965_v33, %v1253_v41 }
0x14bf   :  { %1257 = vrot.lane.b32.xlu1 %v1255_v42, %s3187_s14  ;;  %v1485_v42 = vld [vmem:[#allocation2 + $0xe] sm:$0x3] }
0x1531   :  { %v1258_v43 = vpop.permute.xlu1 %1257 }
0x1532   :  { %v3601_v44 = vadd.f32 %v2967_v39, %v1258_v43 }
0x1534   :  { %v1267_v45 = vpack.c.bf16 %v3601_v44, %v3601_v44 }
0x1536   :  { %1269 = vrot.lane.b32.xlu0 %v1267_v45, %s3926_s23 }
0x15a8   :  { %v1270_v46 = vpop.permute.xlu0 %1269 }
0x15a9   :  { %2796 = vmatmul.mubr.msk.bf16.vlgmr.msra.gmra.mrb[32].mxu1 %vm169_vm1, %v1270_v46 }
0x15aa   :  { %2808 = vmatpush3.bf16.msra.mxu1 %v3473_v7  ;;  %2811 = vmatprep.mubr.msk.bf16.mxu1 %vm3183_vm0, %v3182_v0 }
0x15ab   :  { %2809 = vmatprep.subr.bf16.mxu1 %v3182_v0 }
0x15ae   :  { %2810 = vmatpush3.bf16.msra.mxu1 %v3483_v8 }
0x15af   :  { %2823 = vmatprep.subr.bf16.mxu1 %v3182_v0 }
0x167c   :  { %v1308_v47 = vpop.f32.mrb[32].mxu1 }
0x167d   :  { %v2797_v48 = vpop.f32.mrb[33].mxu1  ;;  %v1323_v49 = vadd.f32 %v1308_v47, %v3511_v37  ;;  %v1316_v53 = vadd.f32 %v1315_v52, %v1308_v47 }
0x167e   :  { %v1311_v50 = vpop.f32.mrb[34].mxu1 }
0x167f   :  { %1325 = vrot.lane.b32.xlu1 %v1323_v49, %s3926_s23  ;;  %v2798_v51 = vpop.f32.mrb[35].mxu1  ;;  %v2567_v7 = vmul.f32 -1.442695, %v1316_v53 }
0x1681   :  { %2968 = vpow2.f32 %v2567_v7 }
0x168b   :  { %v2969_v55 = vpop.eup %2968 }
0x168c   :  { %v1320_v56 = vadd.f32 1.0, %v2969_v55 }
0x168e   :  { %2970 = vrcp.f32 %v1320_v56  ;;  %v3651_v56 = vld [vmem:[%s3900_s17] sm:$0xff]  }
0x1698   :  { %v2971_v57 = vpop.eup %2970 }
0x16f1   :  { %v1326_v58 = vpop.permute.xlu1 %1325 }
0x16f2   :  { %v1328_v8 = vmul.f32 %v2971_v57, %v1326_v58 }
0x16f4   :  { %1330 = vrot.lane.b32.xlu0 %v1328_v8, %s3926_s23 }
0x1766   :  { %v1331_v59 = vpop.permute.xlu0 %1330 }
0x1767   :  { %v1333_v60 = vadd.f32 %v1331_v59, %v1315_v52 }
0x1769   :  { %2972 = vtanh.f32 %v1333_v60  ;;  %v2576_v60 = vld [vmem:[%s3902_s19] ss:$0 sm:$0xff] }
0x1773   :  { %v2973_v61 = vpop.eup %2972 }
0x1774   :  { %v1335_v62 = vsub.f32 %v3601_v44, %v2973_v61 }
0x1776   :  { %1337 = vrot.lane.b32.xlu1 %v1335_v62, %s3184_s30 }
0x17e8   :  { %v1338_v63 = vpop.permute.xlu1 %1337 }
0x17e9   :  { %v1340_v1 = vmul.f32 %v2971_v57, %v1338_v63 }
0x17eb   :  { %1342 = vrot.lane.b32.xlu0 %v1340_v1, %s3187_s14 }
0x185d   :  { %v1343_v2 = vpop.permute.xlu0 %1342 }
0x185e   :  { %v3619_v4 = vadd.f32 %v2973_v61, %v1343_v2 }
0x1860   :  { %v1352_v5 = vpack.c.bf16 %v3619_v4, %v3619_v4 }
0x1862   :  { %1354 = vrot.lane.b32.xlu1 %v1352_v5, %s3926_s23 }
0x18d4   :  { %v1355_v6 = vpop.permute.xlu1 %1354 }
0x18d5   :  { %2804 = vmatmul.mubr.msk.bf16.vlgmr.msra.gmra.mrb[32].mxu0 %vm169_vm1, %v1355_v6 }
0x18d6   :  { %2819 = vmatprep.mubr.msk.bf16.mxu0 %vm3183_vm0, %v3182_v0 }
0x19a8   :  { %v1393_v9 = vpop.f32.mrb[32].mxu0 }
0x19a9   :  { %v2805_v10 = vpop.f32.mrb[33].mxu0  ;;  %v1408_v11 = vadd.f32 %v1393_v9, %v3511_v37  ;;  %v1401_v16 = vadd.f32 %v1400_v14, %v1393_v9 }
0x19aa   :  { %v1396_v12 = vpop.f32.mrb[34].mxu0 }
0x19ab   :  { %1410 = vrot.lane.b32.xlu0 %v1408_v11, %s3926_s23  ;;  %v2806_v13 = vpop.f32.mrb[35].mxu0  ;;  %v2569_v17 = vmul.f32 -1.442695, %v1401_v16 }
0x19ad   :  { %2974 = vpow2.f32 %v2569_v17 }
0x19b7   :  { %v2975_v19 = vpop.eup %2974 }
0x19b8   :  { %v1405_v20 = vadd.f32 1.0, %v2975_v19 }
0x19ba   :  { %2976 = vrcp.f32 %v1405_v20 }
0x19c4   :  { %v2977_v21 = vpop.eup %2976 }
0x1a1d   :  { %v1411_v22 = vpop.permute.xlu0 %1410 }
0x1a1e   :  { %v1413_v23 = vmul.f32 %v2977_v21, %v1411_v22 }
0x1a20   :  { %1415 = vrot.lane.b32.xlu1 %v1413_v23, %s3926_s23 }
0x1a92   :  { %v1416_v24 = vpop.permute.xlu1 %1415 }
0x1a93   :  { %v1418_v25 = vadd.f32 %v1416_v24, %v1400_v14 }
0x1a95   :  { %2978 = vtanh.f32 %v1418_v25 }
0x1a9f   :  { %v2979_v26 = vpop.eup %2978 }
0x1aa0   :  { %v1420_v27 = vsub.f32 %v3619_v4, %v2979_v26 }
0x1aa2   :  { %1422 = vrot.lane.b32.xlu0 %v1420_v27, %s3184_s30 }
0x1b14   :  { %v1423_v29 = vpop.permute.xlu0 %1422 }
0x1b15   :  { %v1425_v31 = vmul.f32 %v2977_v21, %v1423_v29 }
0x1b17   :  { %1427 = vrot.lane.b32.xlu1 %v1425_v31, %s3187_s14 }
0x1b89   :  { %v1428_v32 = vpop.permute.xlu1 %1427 }
0x1b8a   :  { %v1430_v33 = vadd.f32 %v2979_v26, %v1428_v32 }
0x1b8c   :  { %v1437_v34 = vpack.c.bf16 %v1430_v33, %v1430_v33 }
0x1b8e   :  { %1439 = vrot.lane.b32.xlu0 %v1437_v34, %s3926_s23 }
0x1c00   :  { %v1440_v35 = vpop.permute.xlu0 %1439 }
0x1c01   :  { %2812 = vmatmul.mubr.msk.bf16.vlgmr.msra.gmra.mrb[36].mxu1 %vm169_vm1, %v1440_v35 }
0x1c02   :  { %2827 = vmatprep.mubr.msk.bf16.mxu1 %vm3183_vm0, %v3182_v0  ;;  %2824 = vmatpush3.bf16.msra.mxu1 %v3651_v56 }
0x1c03   :  { %2825 = vmatprep.subr.bf16.mxu1 %v3182_v0 }
0x1cd4   :  { %v1478_v36 = vpop.f32.mrb[36].mxu1 }
0x1cd5   :  { %v2813_v38 = vpop.f32.mrb[37].mxu1  ;;  %v1493_v39 = vadd.f32 %v1478_v36, %v3511_v37  ;;  %v1486_v43 = vadd.f32 %v1485_v42, %v1478_v36 }
0x1cd6   :  { %v1481_v40 = vpop.f32.mrb[38].mxu1 }
0x1cd7   :  { %1495 = vrot.lane.b32.xlu1 %v1493_v39, %s3926_s23  ;;  %v2814_v41 = vpop.f32.mrb[39].mxu1  ;;  %v2571_v45 = vmul.f32 -1.442695, %v1486_v43 }
0x1cd9   :  { %2980 = vpow2.f32 %v2571_v45 }
0x1ce3   :  { %v2981_v46 = vpop.eup %2980 }
0x1ce4   :  { %v1490_v47 = vadd.f32 1.0, %v2981_v46 }
0x1ce6   :  { %2982 = vrcp.f32 %v1490_v47 }
0x1cf0   :  { %v2983_v48 = vpop.eup %2982 }
0x1d49   :  { %v1496_v49 = vpop.permute.xlu1 %1495 }
0x1d4a   :  { %v1498_v50 = vmul.f32 %v2983_v48, %v1496_v49 }
0x1d4c   :  { %1500 = vrot.lane.b32.xlu0 %v1498_v50, %s3926_s23 }
0x1dbe   :  { %v1501_v51 = vpop.permute.xlu0 %1500 }
0x1dbf   :  { %v1503_v52 = vadd.f32 %v1501_v51, %v1485_v42 }
0x1dc1   :  { %2984 = vtanh.f32 %v1503_v52 }
0x1dcb   :  { %v2985_v37 = vpop.eup %2984 }
0x1dcc   :  { %v1505_v53 = vsub.f32 %v1430_v33, %v2985_v37 }
0x1dce   :  { %1507 = vrot.lane.b32.xlu1 %v1505_v53, %s3184_s30 }
0x1dd2   :  { %922 = vrot.lane.b32.xlu1 %v3529_v3, %s3926_s23  ;;  %v3658_v3 = vld [vmem:[%s3900_s17 + $0x8] sm:$0xff]  }
0x1dd3   :  { %2826 = vmatpush3.bf16.msra.mxu1 %v3658_v3 }
0x1dd4   :  { %2839 = vmatprep.subr.bf16.mxu1 %v3182_v0 }
0x1dd6   :  { %1092 = vrot.lane.b32.xlu1 %v3565_v54, %s3926_s23  ;;  %2828 = vmatmul.mubr.bf16.vlgmr.msra.gmra.mrb[40].mxu1 %v3185_v15  ;;  %v2936_v15 = vld [vmem:[%s3899_s16] sm:$0xff]  }
0x1dd7   :  { %2840 = vmatpush3.bf16.msra.mxu1 %v3651_v56  ;;  %2843 = vmatprep.mubr.msk.bf16.mxu1 %vm3183_vm0, %v3182_v0 }
0x1dd8   :  { %2841 = vmatprep.subr.bf16.mxu1 %v3182_v0  ;;  %2816 = vmatpush3.bf16.msra.mxu0 %v2936_v15 }
0x1dd9   :  { %2817 = vmatprep.subr.bf16.mxu0 %v3182_v0 }
0x1dda   :  { %1262 = vrot.lane.b32.xlu1 %v3601_v44, %s3926_s23 }
0x1ddb   :  { %2842 = vmatpush3.bf16.msra.mxu1 %v3658_v3 }
0x1ddc   :  { %2855 = vmatprep.subr.bf16.mxu1 %v3182_v0 }
0x1dde   :  { %1432 = vrot.lane.b32.xlu1 %v1430_v33, %s3926_s23  ;;  %v2572_v33 = vld [vmem:[%s3901_s18] ss:$0 sm:$0xff] }
0x1de2   :  { %1764 = vrot.lane.b32.xlu1 %v2576_v60, %s3926_s23 }
0x1e40   :  { %v1508_v7 = vpop.permute.xlu1 %1507 }
0x1e41   :  { %v1510_v55 = vmul.f32 %v2983_v48, %v1508_v7 }
0x1e43   :  { %1512 = vrot.lane.b32.xlu0 %v1510_v55, %s3187_s14 }
0x1e44   :  { %v923_v57 = vpop.permute.xlu1 %922 }
0x1e45   :  { %926 = vst.msk [vmem:[#allocation3] sm:$0x3] %vm925_vm4, %v923_v57 }
0x1e47   :  { %1007 = vrot.lane.b32.xlu0 %v3547_v30, %s3926_s23 }
0x1e48   :  { %v1093_v54 = vpop.permute.xlu1 %1092 }
0x1e49   :  { %1096 = vst.msk [vmem:[#allocation3 + $0x4] sm:$0x3] %vm925_vm4, %v1093_v54 }
0x1e4b   :  { %1177 = vrot.lane.b32.xlu0 %v3583_v18, %s3926_s23  ;;  %v2937_v18 = vld [vmem:[%s3899_s16 + $0x8] sm:$0xff]  }
0x1e4c   :  { %v1263_v44 = vpop.permute.xlu1 %1262  ;;  %2818 = vmatpush3.bf16.msra.mxu0 %v2937_v18  ;;  %v1522_v16 = vld [vmem:[#allocation3] sm:$0x3] }
0x1e4d   :  { %1266 = vst.msk [vmem:[#allocation3 + $0x8] sm:$0x3] %vm925_vm4, %v1263_v44  ;;  %2831 = vmatprep.subr.bf16.mxu0 %v3182_v0 }
0x1e4f   :  { %1347 = vrot.lane.b32.xlu0 %v3619_v4, %s3926_s23 }
0x1e50   :  { %v1433_v30 = vpop.permute.xlu1 %1432  ;;  %v1524_v10 = vld [vmem:[#allocation3 + $0x4] sm:$0x3] }
0x1e51   :  { %1436 = vst.msk [vmem:[#allocation3 + $0xc] sm:$0x3] %vm925_vm4, %v1433_v30 }
0x1e54   :  { %v3697_v12 = vpop.permute.xlu1 %1764  ;;  %v1526_v17 = vld [vmem:[#allocation3 + $0x8] sm:$0x3] }
0x1e58   :  { %v1528_v21 = vld [vmem:[#allocation3 + $0xc] sm:$0x3] }
0x1ea9   :  { %v1750_v63 = vpop.f32.mrb[40].mxu1 }
0x1eaa   :  { %v2829_v1 = vpop.f32.mrb[41].mxu1  ;;  %v1767_v14 = vadd.f32 %v3697_v12, %v1750_v63 }
0x1eab   :  { %v1753_v2 = vpop.f32.mrb[42].mxu1 }
0x1eac   :  { %v2830_v4 = vpop.f32.mrb[43].mxu1 }
0x1eb5   :  { %v1513_v58 = vpop.permute.xlu0 %1512 }
0x1eb6   :  { %v1515_v8 = vadd.f32 %v2985_v37, %v1513_v58 }
0x1eb8   :  { %1517 = vrot.lane.b32.xlu0 %v1515_v8, %s3926_s23 }
0x1eb9   :  { %v1008_v59 = vpop.permute.xlu0 %1007 }
0x1eba   :  { %1011 = vst.msk [vmem:[#allocation3 + $0x2] sm:$0x3] %vm925_vm4, %v1008_v59 }
0x1ebc   :  { %1769 = vrot.lane.b32.xlu0 %v1767_v14, %s3926_s23 }
0x1ebd   :  { %v1178_v61 = vpop.permute.xlu0 %1177 }
0x1ebe   :  { %1181 = vst.msk [vmem:[#allocation3 + $0x6] sm:$0x3] %vm925_vm4, %v1178_v61 }
0x1ec1   :  { %v1348_v62 = vpop.permute.xlu0 %1347  ;;  %v1523_v9 = vld [vmem:[#allocation3 + $0x2] sm:$0x3] }
0x1ec2   :  { %1351 = vst.msk [vmem:[#allocation3 + $0xa] sm:$0x3] %vm925_vm4, %v1348_v62  ;;  %v1538_v19 = vcombine.low %v1522_v16, %v1523_v9 }
0x1ec4   :  { %v1546_v25 = vrot.slane %v1538_v19, %v3508_v28 }
0x1ec5   :  { %v1525_v6 = vld [vmem:[#allocation3 + $0x6] sm:$0x3] }
0x1ec6   :  { %v1539_v13 = vcombine.low %v1524_v10, %v1525_v6 }
0x1ec8   :  { %v1553_v23 = vrot.slane %v1539_v13, %v3508_v28 }
0x1ec9   :  { %v1527_v11 = vld [vmem:[#allocation3 + $0xa] sm:$0x3] }
0x1eca   :  { %v1555_v20 = vcombine.low %v1526_v17, %v1527_v11  ;;  %v1554_v29 = vcombine.low %v1546_v25, %v1553_v23 }
0x1ecc   :  { %v1563_v26 = vrot.slane %v1555_v20, %v3508_v28 }
0x1f2a   :  { %v1518_v5 = vpop.permute.xlu0 %1517 }
0x1f2b   :  { %1521 = vst.msk [vmem:[#allocation3 + $0xe] sm:$0x3] %vm925_vm4, %v1518_v5 }
0x1f2e   :  { %v1770_v57 = vpop.permute.xlu0 %1769 }
0x1f32   :  { %v1529_v22 = vld [vmem:[#allocation3 + $0xe] sm:$0x3] }
0x1f33   :  { %v1556_v24 = vcombine.low %v1528_v21, %v1529_v22 }
0x1f35   :  { %v1570_v27 = vrot.slane %v1556_v24, %v3508_v28 }
0x1f37   :  { %v1571_v31 = vcombine.low %v1563_v26, %v1570_v27 }
0x1f39   :  { %v1574_v32 = vpack.c.bf16 %v1571_v31, %v1554_v29 }
0x1f3b   :  { %2820 = vmatmul.mubr.msk.bf16.vlgmr.msra.gmra.mrb[36].mxu0 %vm169_vm1, %v1574_v32 }
0x1f3c   :  { %2832 = vmatpush3.bf16.msra.mxu0 %v3651_v56  ;;  %2835 = vmatprep.mubr.msk.bf16.mxu0 %vm3183_vm0, %v3182_v0 }
0x1f3d   :  { %2833 = vmatprep.subr.bf16.mxu0 %v3182_v0 }
0x1f40   :  { %2834 = vmatpush3.bf16.msra.mxu0 %v3658_v3 }
0x1f41   :  { %2847 = vmatprep.subr.bf16.mxu0 %v3182_v0 }
0x200e   :  { %v1635_v34 = vpop.f32.mrb[36].mxu0 }
0x200f   :  { %v1636_v35 = vadd.f32 %v2572_v33, %v1635_v34  ;;  %v2821_v36 = vpop.f32.mrb[37].mxu0 }
0x2010   :  { %v1638_v38 = vpop.f32.mrb[38].mxu0 }
0x2011   :  { %v1644_v39 = vcombine.high %v1636_v35, %v1636_v35  ;;  %v1651_v40 = vrot.slane %v1636_v35, %v3508_v28  ;;  %v1639_v41 = vadd.f32 %v2572_v33, %v1638_v38  ;;  %v2822_v42 = vpop.f32.mrb[39].mxu0 }
0x2013   :  { %v1658_v43 = vrot.slane %v1644_v39, %v3508_v28  ;;  %v1659_v45 = vcombine.high %v1651_v40, %v1651_v40  ;;  %1686 = vst.msk [vmem:[#allocation2] sm:$0x3] %vm813_vm3, %v1651_v40  ;;  %v1661_v46 = vcombine.high %v1639_v41, %v1639_v41  ;;  %v1668_v47 = vrot.slane %v1639_v41, %v3508_v28 }
0x2015   :  { %v1660_v48 = vcombine.high %v1658_v43, %v1658_v43  ;;  %1687 = vst.msk [vmem:[#allocation2 + $0x2] sm:$0x3] %vm813_vm3, %v1659_v45  ;;  %1688 = vst.msk [vmem:[#allocation2 + $0x4] sm:$0x3] %vm813_vm3, %v1658_v43  ;;  %v1675_v49 = vrot.slane %v1661_v46, %v3508_v28  ;;  %v1676_v50 = vcombine.high %v1668_v47, %v1668_v47 }
0x2016   :  { %1690 = vst.msk [vmem:[#allocation2 + $0x8] sm:$0x3] %vm813_vm3, %v1668_v47 }
0x2017   :  { %1689 = vst.msk [vmem:[#allocation2 + $0x6] sm:$0x3] %vm813_vm3, %v1660_v48  ;;  %v1677_v51 = vcombine.high %v1675_v49, %v1675_v49  ;;  %1691 = vst.msk [vmem:[#allocation2 + $0xa] sm:$0x3] %vm813_vm3, %v1676_v50 }
0x2018   :  { %1692 = vst.msk [vmem:[#allocation2 + $0xc] sm:$0x3] %vm813_vm3, %v1675_v49 }
0x2019   :  { %1693 = vst.msk [vmem:[#allocation2 + $0xe] sm:$0x3] %vm813_vm3, %v1677_v51 }
0x201a   :  { %v1756_v52 = vld [vmem:[#allocation2] sm:$0x3] }
0x201b   :  { %v1757_v37 = vadd.f32 %v1756_v52, %v1750_v63 }
0x201c   :  { %v1842_v9 = vld [vmem:[#allocation2 + $0x2] sm:$0x3]  ;;  %v1925_v38 = vld [vmem:[#allocation2 + $0x4] sm:$0x3] }
0x201d   :  { %v2579_v53 = vmul.f32 -1.442695, %v1757_v37 }
0x201f   :  { %2986 = vpow2.f32 %v2579_v53 }
0x2029   :  { %v2987_v7 = vpop.eup %2986 }
0x202a   :  { %v1761_v55 = vadd.f32 1.0, %v2987_v7 }
0x202c   :  { %2988 = vrcp.f32 %v1761_v55 }
0x2036   :  { %v2989_v54 = vpop.eup %2988 }
0x2037   :  { %v1772_v44 = vmul.f32 %v2989_v54, %v1770_v57 }
0x2039   :  { %1774 = vrot.lane.b32.xlu1 %v1772_v44, %s3926_s23 }
0x20ab   :  { %v1775_v30 = vpop.permute.xlu1 %1774 }
0x20ac   :  { %v1777_v15 = vadd.f32 %v1775_v30, %v1756_v52 }
0x20ae   :  { %2990 = vtanh.f32 %v1777_v15 }
0x20b8   :  { %v2991_v18 = vpop.eup %2990 }
0x20b9   :  { %v1779_v58 = vsub.f32 0.0, %v2991_v18 }
0x20bb   :  { %1781 = vrot.lane.b32.xlu0 %v1779_v58, %s3184_s30 }
0x212d   :  { %v1782_v8 = vpop.permute.xlu0 %1781 }
0x212e   :  { %v1784_v59 = vmul.f32 %v2989_v54, %v1782_v8 }
0x2130   :  { %1786 = vrot.lane.b32.xlu1 %v1784_v59, %s3187_s14 }
0x21a2   :  { %v1787_v60 = vpop.permute.xlu1 %1786 }
0x21a3   :  { %v3730_v61 = vadd.f32 %v2991_v18, %v1787_v60  ;;  %v2008_v18 = vld [vmem:[#allocation2 + $0x6] sm:$0x3] }
0x21a5   :  { %v1795_v62 = vpack.c.bf16 %v3730_v61, %v3730_v61 }
0x21a7   :  { %1797 = vrot.lane.b32.xlu0 %v1795_v62, %s3926_s23 }
0x2219   :  { %v1798_v63 = vpop.permute.xlu0 %1797 }
0x221a   :  { %2836 = vmatmul.mubr.msk.bf16.vlgmr.msra.gmra.mrb[40].mxu0 %vm169_vm1, %v1798_v63 }
0x221b   :  { %2848 = vmatpush3.bf16.msra.mxu0 %v3651_v56  ;;  %2851 = vmatprep.mubr.msk.bf16.mxu0 %vm3183_vm0, %v3182_v0 }
0x221c   :  { %2849 = vmatprep.subr.bf16.mxu0 %v3182_v0 }
0x221f   :  { %2850 = vmatpush3.bf16.msra.mxu0 %v3658_v3 }
0x2220   :  { %2863 = vmatprep.subr.bf16.mxu0 %v3182_v0 }
0x22ed   :  { %v1836_v1 = vpop.f32.mrb[40].mxu0 }
0x22ee   :  { %v2837_v2 = vpop.f32.mrb[41].mxu0  ;;  %v1850_v4 = vadd.f32 %v1836_v1, %v3697_v12  ;;  %v1843_v10 = vadd.f32 %v1842_v9, %v1836_v1 }
0x22ef   :  { %v1839_v5 = vpop.f32.mrb[42].mxu0 }
0x22f0   :  { %1852 = vrot.lane.b32.xlu1 %v1850_v4, %s3926_s23  ;;  %v2838_v6 = vpop.f32.mrb[43].mxu0  ;;  %v2581_v11 = vmul.f32 -1.442695, %v1843_v10 }
0x22f2   :  { %2992 = vpow2.f32 %v2581_v11 }
0x22fc   :  { %v2993_v13 = vpop.eup %2992 }
0x22fd   :  { %v1847_v14 = vadd.f32 1.0, %v2993_v13 }
0x22ff   :  { %2994 = vrcp.f32 %v1847_v14 }
0x2309   :  { %v2995_v16 = vpop.eup %2994 }
0x2362   :  { %v1853_v17 = vpop.permute.xlu1 %1852 }
0x2363   :  { %v1855_v19 = vmul.f32 %v2995_v16, %v1853_v17 }
0x2365   :  { %1857 = vrot.lane.b32.xlu0 %v1855_v19, %s3926_s23 }
0x23d7   :  { %v1858_v20 = vpop.permute.xlu0 %1857 }
0x23d8   :  { %v1860_v21 = vadd.f32 %v1858_v20, %v1842_v9 }
0x23da   :  { %2996 = vtanh.f32 %v1860_v21 }
0x23e4   :  { %v2997_v22 = vpop.eup %2996 }
0x23e5   :  { %v1862_v23 = vsub.f32 %v3730_v61, %v2997_v22 }
0x23e7   :  { %1864 = vrot.lane.b32.xlu1 %v1862_v23, %s3184_s30  ;;  %v2091_v23 = vld [vmem:[#allocation2 + $0x8] sm:$0x3] }
0x2459   :  { %v1865_v24 = vpop.permute.xlu1 %1864 }
0x245a   :  { %v1867_v25 = vmul.f32 %v2995_v16, %v1865_v24 }
0x245c   :  { %1869 = vrot.lane.b32.xlu0 %v1867_v25, %s3187_s14 }
0x24ce   :  { %v1870_v26 = vpop.permute.xlu0 %1869 }
0x24cf   :  { %v3748_v27 = vadd.f32 %v2997_v22, %v1870_v26 }
0x24d1   :  { %v1878_v29 = vpack.c.bf16 %v3748_v27, %v3748_v27 }
0x24d3   :  { %1880 = vrot.lane.b32.xlu1 %v1878_v29, %s3926_s23 }
0x2545   :  { %v1881_v31 = vpop.permute.xlu1 %1880 }
0x2546   :  { %2844 = vmatmul.mubr.msk.bf16.vlgmr.msra.gmra.mrb[44].mxu1 %vm169_vm1, %v1881_v31 }
0x2547   :  { %2856 = vmatpush3.bf16.msra.mxu1 %v3651_v56  ;;  %2859 = vmatprep.mubr.msk.bf16.mxu1 %vm3183_vm0, %v3182_v0 }
0x2548   :  { %2857 = vmatprep.subr.bf16.mxu1 %v3182_v0 }
0x254b   :  { %2858 = vmatpush3.bf16.msra.mxu1 %v3658_v3 }
0x254c   :  { %2871 = vmatprep.subr.bf16.mxu1 %v3182_v0 }
0x2619   :  { %v1919_v32 = vpop.f32.mrb[44].mxu1 }
0x261a   :  { %v2845_v33 = vpop.f32.mrb[45].mxu1  ;;  %v1933_v34 = vadd.f32 %v1919_v32, %v3697_v12  ;;  %v1926_v39 = vadd.f32 %v1925_v38, %v1919_v32 }
0x261b   :  { %v1922_v35 = vpop.f32.mrb[46].mxu1 }
0x261c   :  { %1935 = vrot.lane.b32.xlu0 %v1933_v34, %s3926_s23  ;;  %v2846_v36 = vpop.f32.mrb[47].mxu1  ;;  %v2583_v40 = vmul.f32 -1.442695, %v1926_v39 }
0x261e   :  { %2998 = vpow2.f32 %v2583_v40 }
0x2628   :  { %v2999_v41 = vpop.eup %2998 }
0x2629   :  { %v1930_v42 = vadd.f32 1.0, %v2999_v41 }
0x262b   :  { %3000 = vrcp.f32 %v1930_v42 }
0x2635   :  { %v3001_v43 = vpop.eup %3000 }
0x268e   :  { %v1936_v45 = vpop.permute.xlu0 %1935 }
0x268f   :  { %v1938_v46 = vmul.f32 %v3001_v43, %v1936_v45 }
0x2691   :  { %1940 = vrot.lane.b32.xlu1 %v1938_v46, %s3926_s23 }
0x2703   :  { %v1941_v47 = vpop.permute.xlu1 %1940 }
0x2704   :  { %v1943_v48 = vadd.f32 %v1941_v47, %v1925_v38 }
0x2706   :  { %3002 = vtanh.f32 %v1943_v48 }
0x2710   :  { %v3003_v49 = vpop.eup %3002 }
0x2711   :  { %v1945_v50 = vsub.f32 %v3748_v27, %v3003_v49 }
0x2713   :  { %1947 = vrot.lane.b32.xlu0 %v1945_v50, %s3184_s30 }
0x2785   :  { %v1948_v51 = vpop.permute.xlu0 %1947 }
0x2786   :  { %v1950_v52 = vmul.f32 %v3001_v43, %v1948_v51  ;;  %v2174_v51 = vld [vmem:[#allocation2 + $0xa] sm:$0x3] }
0x2788   :  { %1952 = vrot.lane.b32.xlu1 %v1950_v52, %s3187_s14 }
0x27fa   :  { %v1953_v37 = vpop.permute.xlu1 %1952 }
0x27fb   :  { %v3766_v53 = vadd.f32 %v3003_v49, %v1953_v37 }
0x27fd   :  { %v1961_v7 = vpack.c.bf16 %v3766_v53, %v3766_v53 }
0x27ff   :  { %1963 = vrot.lane.b32.xlu0 %v1961_v7, %s3926_s23 }
0x2871   :  { %v1964_v55 = vpop.permute.xlu0 %1963 }
0x2872   :  { %2852 = vmatmul.mubr.msk.bf16.vlgmr.msra.gmra.mrb[44].mxu0 %vm169_vm1, %v1964_v55 }
0x2873   :  { %2864 = vmatpush3.bf16.msra.mxu0 %v3651_v56  ;;  %2867 = vmatprep.mubr.msk.bf16.mxu0 %vm3183_vm0, %v3182_v0 }
0x2874   :  { %2865 = vmatprep.subr.bf16.mxu0 %v3182_v0 }
0x2877   :  { %2866 = vmatpush3.bf16.msra.mxu0 %v3658_v3 }
0x2878   :  { %2879 = vmatprep.subr.bf16.mxu0 %v3182_v0 }
0x2945   :  { %v2002_v57 = vpop.f32.mrb[44].mxu0 }
0x2946   :  { %v2853_v54 = vpop.f32.mrb[45].mxu0  ;;  %v2016_v44 = vadd.f32 %v2002_v57, %v3697_v12  ;;  %v2009_v58 = vadd.f32 %v2008_v18, %v2002_v57 }
0x2947   :  { %v2005_v30 = vpop.f32.mrb[46].mxu0 }
0x2948   :  { %2018 = vrot.lane.b32.xlu1 %v2016_v44, %s3926_s23  ;;  %v2854_v15 = vpop.f32.mrb[47].mxu0  ;;  %v2585_v8 = vmul.f32 -1.442695, %v2009_v58 }
0x294a   :  { %3004 = vpow2.f32 %v2585_v8 }
0x2954   :  { %v3005_v59 = vpop.eup %3004 }
0x2955   :  { %v2013_v60 = vadd.f32 1.0, %v3005_v59 }
0x2957   :  { %3006 = vrcp.f32 %v2013_v60 }
0x2961   :  { %v3007_v62 = vpop.eup %3006 }
0x29ba   :  { %v2019_v63 = vpop.permute.xlu1 %2018 }
0x29bb   :  { %v2021_v1 = vmul.f32 %v3007_v62, %v2019_v63 }
0x29bd   :  { %2023 = vrot.lane.b32.xlu0 %v2021_v1, %s3926_s23 }
0x2a2f   :  { %v2024_v2 = vpop.permute.xlu0 %2023 }
0x2a30   :  { %v2026_v4 = vadd.f32 %v2024_v2, %v2008_v18 }
0x2a32   :  { %3008 = vtanh.f32 %v2026_v4 }
0x2a3c   :  { %v3009_v5 = vpop.eup %3008 }
0x2a3d   :  { %v2028_v6 = vsub.f32 %v3766_v53, %v3009_v5 }
0x2a3f   :  { %2030 = vrot.lane.b32.xlu1 %v2028_v6, %s3184_s30 }
0x2ab1   :  { %v2031_v9 = vpop.permute.xlu1 %2030 }
0x2ab2   :  { %v2033_v10 = vmul.f32 %v3007_v62, %v2031_v9 }
0x2ab4   :  { %2035 = vrot.lane.b32.xlu0 %v2033_v10, %s3187_s14 }
0x2b26   :  { %v2036_v11 = vpop.permute.xlu0 %2035 }
0x2b27   :  { %v3784_v13 = vadd.f32 %v3009_v5, %v2036_v11  ;;  %v2257_v5 = vld [vmem:[#allocation2 + $0xc] sm:$0x3] }
0x2b29   :  { %v2044_v14 = vpack.c.bf16 %v3784_v13, %v3784_v13 }
0x2b2b   :  { %2046 = vrot.lane.b32.xlu1 %v2044_v14, %s3926_s23 }
0x2b9d   :  { %v2047_v16 = vpop.permute.xlu1 %2046 }
0x2b9e   :  { %2860 = vmatmul.mubr.msk.bf16.vlgmr.msra.gmra.mrb[48].mxu1 %vm169_vm1, %v2047_v16 }
0x2b9f   :  { %2872 = vmatpush3.bf16.msra.mxu1 %v3651_v56  ;;  %2875 = vmatprep.mubr.msk.bf16.mxu1 %vm3183_vm0, %v3182_v0 }
0x2ba0   :  { %2873 = vmatprep.subr.bf16.mxu1 %v3182_v0 }
0x2ba3   :  { %2874 = vmatpush3.bf16.msra.mxu1 %v3658_v3 }
0x2c71   :  { %v2085_v17 = vpop.f32.mrb[48].mxu1 }
0x2c72   :  { %v2861_v19 = vpop.f32.mrb[49].mxu1  ;;  %v2099_v20 = vadd.f32 %v2085_v17, %v3697_v12  ;;  %v2092_v24 = vadd.f32 %v2091_v23, %v2085_v17 }
0x2c73   :  { %v2088_v21 = vpop.f32.mrb[50].mxu1 }
0x2c74   :  { %2101 = vrot.lane.b32.xlu0 %v2099_v20, %s3926_s23  ;;  %v2862_v22 = vpop.f32.mrb[51].mxu1  ;;  %v2587_v25 = vmul.f32 -1.442695, %v2092_v24 }
0x2c76   :  { %3010 = vpow2.f32 %v2587_v25 }
0x2c80   :  { %v3011_v26 = vpop.eup %3010 }
0x2c81   :  { %v2096_v29 = vadd.f32 1.0, %v3011_v26 }
0x2c83   :  { %3012 = vrcp.f32 %v2096_v29 }
0x2c8d   :  { %v3013_v31 = vpop.eup %3012 }
0x2ce6   :  { %v2102_v32 = vpop.permute.xlu0 %2101 }
0x2ce7   :  { %v2104_v33 = vmul.f32 %v3013_v31, %v2102_v32 }
0x2ce9   :  { %2106 = vrot.lane.b32.xlu1 %v2104_v33, %s3926_s23 }
0x2d5b   :  { %v2107_v34 = vpop.permute.xlu1 %2106 }
0x2d5c   :  { %v2109_v35 = vadd.f32 %v2107_v34, %v2091_v23 }
0x2d5e   :  { %3014 = vtanh.f32 %v2109_v35 }
0x2d68   :  { %v3015_v36 = vpop.eup %3014 }
0x2d69   :  { %v2111_v38 = vsub.f32 %v3784_v13, %v3015_v36 }
0x2d6b   :  { %2113 = vrot.lane.b32.xlu0 %v2111_v38, %s3184_s30  ;;  %v2340_v38 = vld [vmem:[#allocation2 + $0xe] sm:$0x3] }
0x2ddd   :  { %v2114_v39 = vpop.permute.xlu0 %2113 }
0x2dde   :  { %v2116_v40 = vmul.f32 %v3013_v31, %v2114_v39 }
0x2de0   :  { %2118 = vrot.lane.b32.xlu1 %v2116_v40, %s3187_s14 }
0x2e52   :  { %v2119_v41 = vpop.permute.xlu1 %2118 }
0x2e53   :  { %v3801_v42 = vadd.f32 %v3015_v36, %v2119_v41 }
0x2e55   :  { %v2127_v43 = vpack.c.bf16 %v3801_v42, %v3801_v42 }
0x2e57   :  { %2129 = vrot.lane.b32.xlu0 %v2127_v43, %s3926_s23 }
0x2ec9   :  { %v2130_v45 = vpop.permute.xlu0 %2129 }
0x2eca   :  { %2868 = vmatmul.mubr.msk.bf16.vlgmr.msra.gmra.mrb[48].mxu0 %vm169_vm1, %v2130_v45 }
0x2ecb   :  { %2880 = vmatpush3.bf16.msra.mxu0 %v3651_v56  ;;  %2883 = vmatprep.mubr.msk.bf16.mxu0 %vm3183_vm0, %v3182_v0 }
0x2ecc   :  { %2881 = vmatprep.subr.bf16.mxu0 %v3182_v0 }
0x2ecf   :  { %2882 = vmatpush3.bf16.msra.mxu0 %v3658_v3 }
0x2f9d   :  { %v2168_v46 = vpop.f32.mrb[48].mxu0 }
0x2f9e   :  { %v2869_v47 = vpop.f32.mrb[49].mxu0  ;;  %v2182_v48 = vadd.f32 %v2168_v46, %v3697_v12  ;;  %v2175_v52 = vadd.f32 %v2174_v51, %v2168_v46 }
0x2f9f   :  { %v2171_v49 = vpop.f32.mrb[50].mxu0 }
0x2fa0   :  { %2184 = vrot.lane.b32.xlu1 %v2182_v48, %s3926_s23  ;;  %v2870_v50 = vpop.f32.mrb[51].mxu0  ;;  %v2589_v37 = vmul.f32 -1.442695, %v2175_v52 }
0x2fa2   :  { %3016 = vpow2.f32 %v2589_v37 }
0x2fac   :  { %v3017_v56 = vpop.eup %3016 }
0x2fad   :  { %v2179_v7 = vadd.f32 1.0, %v3017_v56 }
0x2faf   :  { %3018 = vrcp.f32 %v2179_v7 }
0x2fb9   :  { %v3019_v55 = vpop.eup %3018 }
0x3012   :  { %v2185_v57 = vpop.permute.xlu1 %2184 }
0x3013   :  { %v2187_v0 = vmul.f32 %v3019_v55, %v2185_v57 }
0x3015   :  { %2189 = vrot.lane.b32.xlu0 %v2187_v0, %s3926_s23 }
0x3087   :  { %v2190_v3 = vpop.permute.xlu0 %2189 }
0x3088   :  { %v2192_v54 = vadd.f32 %v2190_v3, %v2174_v51 }
0x308a   :  { %3020 = vtanh.f32 %v2192_v54 }
0x3094   :  { %v3021_v44 = vpop.eup %3020 }
0x3095   :  { %v2194_v30 = vsub.f32 %v3801_v42, %v3021_v44 }
0x3097   :  { %2196 = vrot.lane.b32.xlu1 %v2194_v30, %s3184_s30 }
0x3109   :  { %v2197_v15 = vpop.permute.xlu1 %2196 }
0x310a   :  { %v2199_v18 = vmul.f32 %v3019_v55, %v2197_v15  ;;  %v2387_v55 = vld [vmem:[%s3903_s20 + $0x18] sm:$0xff] }
0x310c   :  { %2201 = vrot.lane.b32.xlu0 %v2199_v18, %s3187_s14 }
0x317e   :  { %v2202_v58 = vpop.permute.xlu0 %2201 }
0x317f   :  { %v3818_v8 = vadd.f32 %v3021_v44, %v2202_v58 }
0x3181   :  { %v2210_v59 = vpack.c.bf16 %v3818_v8, %v3818_v8 }
0x3183   :  { %2212 = vrot.lane.b32.xlu1 %v2210_v59, %s3926_s23 }
0x31f5   :  { %v2213_v60 = vpop.permute.xlu1 %2212 }
0x31f6   :  { %2876 = vmatmul.mubr.msk.bf16.vlgmr.msra.gmra.mrb[52].mxu1 %vm169_vm1, %v2213_v60 }
0x32c9   :  { %v2251_v62 = vpop.f32.mrb[52].mxu1 }
0x32ca   :  { %v2877_v63 = vpop.f32.mrb[53].mxu1  ;;  %v2265_v1 = vadd.f32 %v2251_v62, %v3697_v12  ;;  %v2258_v6 = vadd.f32 %v2257_v5, %v2251_v62 }
0x32cb   :  { %v2254_v2 = vpop.f32.mrb[54].mxu1 }
0x32cc   :  { %2267 = vrot.lane.b32.xlu0 %v2265_v1, %s3926_s23  ;;  %v2878_v4 = vpop.f32.mrb[55].mxu1  ;;  %v2591_v9 = vmul.f32 -1.442695, %v2258_v6 }
0x32ce   :  { %3022 = vpow2.f32 %v2591_v9 }
0x32d8   :  { %v3023_v10 = vpop.eup %3022 }
0x32d9   :  { %v2262_v11 = vadd.f32 1.0, %v3023_v10 }
0x32db   :  { %3024 = vrcp.f32 %v2262_v11 }
0x32e5   :  { %v3025_v14 = vpop.eup %3024 }
0x333e   :  { %v2268_v16 = vpop.permute.xlu0 %2267 }
0x333f   :  { %v2270_v17 = vmul.f32 %v3025_v14, %v2268_v16 }
0x3341   :  { %2272 = vrot.lane.b32.xlu1 %v2270_v17, %s3926_s23 }
0x33b3   :  { %v2273_v19 = vpop.permute.xlu1 %2272 }
0x33b4   :  { %v2275_v20 = vadd.f32 %v2273_v19, %v2257_v5  ;;  %v2594_v19 = vld [vmem:[#allocation12] ss:$0 sm:$0xff] }
0x33b6   :  { %3026 = vtanh.f32 %v2275_v20 }
0x33c0   :  { %v3027_v21 = vpop.eup %3026 }
0x33c1   :  { %v2277_v22 = vsub.f32 %v3818_v8, %v3027_v21 }
0x33c3   :  { %2279 = vrot.lane.b32.xlu0 %v2277_v22, %s3184_s30 }
0x3435   :  { %v2280_v23 = vpop.permute.xlu0 %2279 }
0x3436   :  { %v2282_v24 = vmul.f32 %v3025_v14, %v2280_v23 }
0x3438   :  { %2284 = vrot.lane.b32.xlu1 %v2282_v24, %s3187_s14 }
0x34aa   :  { %v2285_v25 = vpop.permute.xlu1 %2284 }
0x34ab   :  { %v2287_v26 = vadd.f32 %v3027_v21, %v2285_v25 }
0x34ad   :  { %v2293_v29 = vpack.c.bf16 %v2287_v26, %v2287_v26 }
0x34af   :  { %2295 = vrot.lane.b32.xlu0 %v2293_v29, %s3926_s23 }
0x3521   :  { %v2296_v31 = vpop.permute.xlu0 %2295 }
0x3522   :  { %2884 = vmatmul.mubr.msk.bf16.vlgmr.msra.gmra.mrb[52].mxu0 %vm169_vm1, %v2296_v31 }
0x35f5   :  { %v2334_v32 = vpop.f32.mrb[52].mxu0 }
0x35f6   :  { %v2885_v33 = vpop.f32.mrb[53].mxu0  ;;  %v2348_v34 = vadd.f32 %v2334_v32, %v3697_v12  ;;  %v2341_v39 = vadd.f32 %v2340_v38, %v2334_v32 }
0x35f7   :  { %v2337_v35 = vpop.f32.mrb[54].mxu0 }
0x35f8   :  { %2350 = vrot.lane.b32.xlu1 %v2348_v34, %s3926_s23  ;;  %v2886_v36 = vpop.f32.mrb[55].mxu0  ;;  %v2593_v40 = vmul.f32 -1.442695, %v2341_v39 }
0x35fa   :  { %3028 = vpow2.f32 %v2593_v40 }
0x3604   :  { %v3029_v41 = vpop.eup %3028 }
0x3605   :  { %v2345_v43 = vadd.f32 1.0, %v3029_v41 }
0x3607   :  { %3030 = vrcp.f32 %v2345_v43 }
0x3611   :  { %v3031_v45 = vpop.eup %3030 }
0x366a   :  { %v2351_v46 = vpop.permute.xlu1 %2350 }
0x366b   :  { %v2353_v47 = vmul.f32 %v3031_v45, %v2351_v46 }
0x366d   :  { %2355 = vrot.lane.b32.xlu0 %v2353_v47, %s3926_s23 }
0x36df   :  { %v2356_v48 = vpop.permute.xlu0 %2355 }
0x36e0   :  { %v2358_v49 = vadd.f32 %v2356_v48, %v2340_v38 }
0x36e2   :  { %3032 = vtanh.f32 %v2358_v49 }
0x36ec   :  { %v3033_v12 = vpop.eup %3032 }
0x36ed   :  { %v2360_v50 = vsub.f32 %v2287_v26, %v3033_v12 }
0x36ef   :  { %2362 = vrot.lane.b32.xlu1 %v2360_v50, %s3184_s30 }
0x36f3   :  { %1791 = vrot.lane.b32.xlu1 %v3730_v61, %s3926_s23 }
0x36f7   :  { %1957 = vrot.lane.b32.xlu1 %v3766_v53, %s3926_s23 }
0x36fb   :  { %2123 = vrot.lane.b32.xlu1 %v3801_v42, %s3926_s23  ;;  %v2384_v42 = vld [vmem:[%s3903_s20] sm:$0xff] }
0x36ff   :  { %2289 = vrot.lane.b32.xlu1 %v2287_v26, %s3926_s23 }
0x3761   :  { %v2363_v51 = vpop.permute.xlu1 %2362 }
0x3762   :  { %v2365_v52 = vmul.f32 %v3031_v45, %v2363_v51 }
0x3764   :  { %2367 = vrot.lane.b32.xlu0 %v2365_v52, %s3187_s14 }
0x3765   :  { %v1792_v37 = vpop.permute.xlu1 %1791 }
0x3766   :  { %1794 = vst.msk [vmem:[#allocation3] sm:$0x3] %vm925_vm4, %v1792_v37 }
0x3768   :  { %1874 = vrot.lane.b32.xlu0 %v3748_v27, %s3926_s23  ;;  %v2385_v27 = vld [vmem:[%s3903_s20 + $0x8] sm:$0xff] }
0x3769   :  { %v1958_v56 = vpop.permute.xlu1 %1957  ;;  %v2898_v7 = vpack.c.bf16 %v2385_v27, %v2384_v42 }
0x376a   :  { %1960 = vst.msk [vmem:[#allocation3 + $0x4] sm:$0x3] %vm925_vm4, %v1958_v56 }
0x376b   :  { %2899 = vmatprep.subr.bf16.mxu1 %v2898_v7 }
0x376c   :  { %2040 = vrot.lane.b32.xlu0 %v3784_v13, %s3926_s23  ;;  %v2386_v13 = vld [vmem:[%s3903_s20 + $0x10] sm:$0xff]  ;;  %2901 = vmatpush3.bf16.msra.mxu1 %v2898_v7 }
0x376d   :  { %v2124_v61 = vpop.permute.xlu1 %2123  ;;  %v2902_v57 = vpack.c.bf16 %v2387_v55, %v2386_v13  ;;  %v2376_v18 = vld [vmem:[#allocation3] sm:$0x3] }
0x376e   :  { %2126 = vst.msk [vmem:[#allocation3 + $0x8] sm:$0x3] %vm925_vm4, %v2124_v61 }
0x376f   :  { %2903 = vmatprep.subr.bf16.mxu1 %v2902_v57 }
0x3770   :  { %2206 = vrot.lane.b32.xlu0 %v3818_v8, %s3926_s23  ;;  %2905 = vmatpush3.bf16.msra.mxu1 %v2902_v57 }
0x3771   :  { %v2290_v53 = vpop.permute.xlu1 %2289  ;;  %v2378_v8 = vld [vmem:[#allocation3 + $0x4] sm:$0x3] }
0x3772   :  { %2292 = vst.msk [vmem:[#allocation3 + $0xc] sm:$0x3] %vm925_vm4, %v2290_v53 }
0x3775   :  { %v2380_v5 = vld [vmem:[#allocation3 + $0x8] sm:$0x3] }
0x3779   :  { %v2382_v9 = vld [vmem:[#allocation3 + $0xc] sm:$0x3] }
0x37d6   :  { %v2368_v0 = vpop.permute.xlu0 %2367 }
0x37d7   :  { %v2370_v3 = vadd.f32 %v3033_v12, %v2368_v0 }
0x37d9   :  { %2372 = vrot.lane.b32.xlu0 %v2370_v3, %s3926_s23 }
0x37da   :  { %v1875_v54 = vpop.permute.xlu0 %1874 }
0x37db   :  { %1877 = vst.msk [vmem:[#allocation3 + $0x2] sm:$0x3] %vm925_vm4, %v1875_v54 }
0x37de   :  { %v2041_v44 = vpop.permute.xlu0 %2040 }
0x37df   :  { %2043 = vst.msk [vmem:[#allocation3 + $0x6] sm:$0x3] %vm925_vm4, %v2041_v44 }
0x37e2   :  { %v2207_v30 = vpop.permute.xlu0 %2206  ;;  %v2377_v15 = vld [vmem:[#allocation3 + $0x2] sm:$0x3] }
0x37e3   :  { %2209 = vst.msk [vmem:[#allocation3 + $0xa] sm:$0x3] %vm925_vm4, %v2207_v30  ;;  %v2403_v58 = vcombine.low %v2376_v18, %v2377_v15 }
0x37e5   :  { %v2411_v62 = vrot.slane %v2403_v58, %v3508_v28 }
0x37e6   :  { %v2379_v59 = vld [vmem:[#allocation3 + $0x6] sm:$0x3] }
0x37e7   :  { %v2404_v60 = vcombine.low %v2378_v8, %v2379_v59 }
0x37e9   :  { %v2418_v63 = vrot.slane %v2404_v60, %v3508_v28 }
0x37ea   :  { %v2381_v4 = vld [vmem:[#allocation3 + $0xa] sm:$0x3] }
0x37eb   :  { %v2419_v1 = vcombine.low %v2411_v62, %v2418_v63  ;;  %v2420_v6 = vcombine.low %v2380_v5, %v2381_v4 }
0x37ed   :  { %2895 = vmatprep.mubr.msk.f32.mxu1 %vm169_vm1, %v2419_v1  ;;  %v2428_v14 = vrot.slane %v2420_v6, %v3508_v28 }
0x384b   :  { %v2373_v2 = vpop.permute.xlu0 %2372 }
0x384c   :  { %2375 = vst.msk [vmem:[#allocation3 + $0xe] sm:$0x3] %vm925_vm4, %v2373_v2 }
0x3853   :  { %v2383_v10 = vld [vmem:[#allocation3 + $0xe] sm:$0x3] }
0x3854   :  { %v2421_v11 = vcombine.low %v2382_v9, %v2383_v10 }
0x3856   :  { %v2435_v16 = vrot.slane %v2421_v11, %v3508_v28 }
0x3858   :  { %v2436_v17 = vcombine.low %v2428_v14, %v2435_v16 }
0x385a   :  { %2896 = vmatmul.mubr.msk.f32.vlgmr.msra.gmra.mrb[56].mxu1 %vm169_vm1, %v2436_v17 }
0x392d   :  { %v2897_v20 = vpop.f32.mrb[56].mxu1 }
0x392e   :  { %v2513_v21 = vadd.f32 %v2897_v20, %v2594_v19  ;;  %v2507_v22 = vpop.f32.mrb[57].mxu1 }
0x392f   :  { %v2508_v23 = vadd.f32 %v2594_v19, %v2507_v22 }
0x3930   :  { %2517 = vst [vmem:[%s3932_s6 + $0x8] sm:$0xff] %v2513_v21 }
0x3931   :  { %2516 = vst [vmem:[%s3932_s6] sm:$0xff] %v2508_v23 }
0x3932   :  { %2522 = vsyncpa [#allocation5], 1 }
0x3933   :  { %2523 = vsyncpa [#allocation7], 1 }
0x3934   :  { %2524 = vsyncpa [#allocation10], 1 }
0x3935   :  { %2525 = vsyncpa [#allocation13], 1 }

</bundles_post_ra>
